<compile_context>
chip_gen: v5e
topology: v5e:2x2
jax: 0.10.0
libtpu: 0.0.40
codegen_flags: <defaults>
</compile_context>

<pallas_src>
import functools

import numpy as np
import jax
import jax.numpy as jnp
from jax import lax
from jax.experimental import pallas as pl
from jax.experimental.pallas import tpu as pltpu

# ---- config (mirrors ConnectedComponentsQuality.__init__ defaults) ----------
DATA_DIM = 2
MIN_SIZE = 5
TOLERANCE = 2.0
ALPHA = 0.5
THRESHOLD = 0.5
GREATER_IS_ROAD = True
EPS = 1e-8

_BIG = 1 << 30          # "no label" sentinel for background / out-of-bounds


def _round_up(v, m):
    return ((v + m - 1) // m) * m


# -----------------------------------------------------------------------------
# Pallas kernel: binarize + 8-connected component labeling (min-label relax)
# -----------------------------------------------------------------------------
def _ccl_kernel(x_ref, lbl_ref, *, threshold, greater_is_road,
                hb, wb, nsteps_h, nsteps_w, max_outer):
    """One packed (hb, wb) block per grid step (several images per block).

    Output label = (min linear index within the component) + 1, background = 0.
    Equivalent to skimage.measure.label(connectivity=2) up to a monotone
    relabeling that preserves raster-scan component ordering (all the host-side
    regionprops / greedy matching depends on).
    """
    x = x_ref[...]                                    # (hb, wb) float32
    if greater_is_road:
        mask = x > threshold
    else:
        mask = x <= threshold

    rows = lax.broadcasted_iota(jnp.int32, (hb, wb), 0)
    cols = lax.broadcasted_iota(jnp.int32, (hb, wb), 1)
    big = jnp.int32(_BIG)
    init = jnp.where(mask, rows * wb + cols + 1, big)
    mi = mask.astype(jnp.int32)

    # ---- loop-invariant precompute (hoisted out of the propagation loop) ----
    def build_scan(idx, size, axis, nsteps, reverse):
        """Bit-packed update predicates for a segmented prefix-min
        (Hillis-Steele) scan along `axis`.  Bit k of the returned int32 plane
        is set where v[p] <- min(v[p], v[p -/+ 2**k]) stays inside the same
        contiguous foreground run (and in bounds), so the update can never
        merge labels across different components."""
        if not reverse:
            neighbor_fg = jnp.where(idx >= 1, pltpu.roll(mi, 1, axis), 0)
            guards = [idx >= (1 << k) for k in range(nsteps)]
            shifts = [1 << k for k in range(nsteps)]          # take from lower idx
        else:
            neighbor_fg = jnp.where(idx <= size - 2,
                                    pltpu.roll(mi, size - 1, axis), 0)
            guards = [idx < size - (1 << k) for k in range(nsteps)]
            shifts = [size - (1 << k) for k in range(nsteps)]  # take from higher idx
        flag = 1 - neighbor_fg            # 1 where a new run starts (scan order)
        packed = jnp.zeros_like(mi)
        for k in range(nsteps):
            can = jnp.logical_and(flag == 0, guards[k])
            packed = packed | (can.astype(jnp.int32) << k)
            flag = flag | jnp.where(guards[k],
                                    pltpu.roll(flag, shifts[k], axis), 0)
        return packed, shifts, axis

    scans = (
        build_scan(cols, wb, 1, nsteps_w, False),   # row runs, from the left
        build_scan(cols, wb, 1, nsteps_w, True),    # row runs, from the right
        build_scan(rows, hb, 0, nsteps_h, False),   # column runs, from above
        build_scan(rows, hb, 0, nsteps_h, True),    # column runs, from below
    )

    # Hoisted +-1 neighbour validity masks (block-edge guards, 8-connectivity).
    has_up, has_down = rows > 0, rows < hb - 1
    has_left, has_right = cols > 0, cols < wb - 1

    def super_step(lab):
        # (a) log-step segmented run-min along rows then columns: labels cross
        #     a whole foreground run in O(log) XLU rotations.
        v = lab
        for packed, shifts, axis in scans:
            for k, s in enumerate(shifts):
                ok = (packed & (1 << k)) != 0
                v = jnp.where(ok, jnp.minimum(v, pltpu.roll(v, s, axis)), v)
        v = jnp.where(mask, v, big)       # scans may have written into bg cells
        # (b) separable 3x3 (8-connected) min: vertical pass, then horizontal.
        up = jnp.where(has_up, pltpu.roll(v, 1, 0), big)
        dn = jnp.where(has_down, pltpu.roll(v, hb - 1, 0), big)
        t = jnp.minimum(v, jnp.minimum(up, dn))
        lt = jnp.where(has_left, pltpu.roll(t, 1, 1), big)
        rt = jnp.where(has_right, pltpu.roll(t, wb - 1, 1), big)
        return jnp.where(mask, jnp.minimum(t, jnp.minimum(lt, rt)), big)

    # Convergence-checked propagation.  Each super-step is heavy (full row/col
    # run propagation + one 8-connected hop), so one change-test per step is
    # already well amortized; max_outer is only a safety cap (never hit).
    def cond(carry):
        it, _, changed = carry
        return jnp.logical_and(changed, it < max_outer)

    def body(carry):
        it, lab, _ = carry
        new = super_step(lab)
        return it + 1, new, jnp.max(lab - new) > 0   # labels only decrease

    _, lab, _ = lax.while_loop(cond, body, (jnp.int32(0), init, jnp.bool_(True)))

    lbl_ref[...] = jnp.where(mask, lab, 0)


@jax.jit
def connected_components_label(x):
    """x: (M, H, W) float  ->  (M, H, W) int32 label maps (0 = background).

    8-connected components; positive labels are monotone in the raster-scan
    order of each component's first pixel.
    """
    M, H, W = map(int, x.shape)

    # ---- pack images into an (8,128)-aligned block layout -------------------
    # Small images go several-per-block along both lanes and sublanes, with a
    # >=1-cell background gap between slots so components never merge across
    # images (8-connectivity needs distance >= 2).
    if W + 1 <= 128:
        n_lane, slot_w, wb = 128 // (W + 1), W + 1, 128
    else:
        n_lane, slot_w, wb = 1, W, _round_up(W, 128)

    slot_h = _round_up(H + 1, 8)
    n_sub = min(-(-M // n_lane), max(1, 256 // slot_h))
    if n_sub == 1:
        slot_h = _round_up(H, 8)          # single vertical slot: no gap needed
    hb = n_sub * slot_h

    per_group = n_sub * n_lane
    num_groups = -(-M // per_group)
    m_pad = num_groups * per_group

    assert hb * wb < _BIG, "label index would overflow the int32 sentinel"

    bg_fill = (THRESHOLD - 1.0) if GREATER_IS_ROAD else (THRESHOLD + 1.0)
    xp = jnp.full((m_pad, slot_h, slot_w), bg_fill, dtype=jnp.float32)
    xp = xp.at[:M, :H, :W].set(x.astype(jnp.float32))
    xp = xp.reshape(num_groups, n_sub, n_lane, slot_h, slot_w)
    xp = xp.transpose(0, 1, 3, 2, 4).reshape(num_groups, hb, n_lane * slot_w)
    if n_lane * slot_w < wb:
        xp = jnp.pad(xp, ((0, 0), (0, 0), (0, wb - n_lane * slot_w)),
                     constant_values=bg_fill)
    x2d = xp.reshape(num_groups * hb, wb)

    nsteps_w = max(1, (wb - 1).bit_length())   # 2**nsteps >= wb
    nsteps_h = max(1, (hb - 1).bit_length())

    kernel = functools.partial(
        _ccl_kernel, threshold=THRESHOLD, greater_is_road=GREATER_IS_ROAD,
        hb=hb, wb=wb, nsteps_h=nsteps_h, nsteps_w=nsteps_w, max_outer=hb * wb)

    # VMEM budget: block + out (double-buffered) + ~a dozen int32 temps.
    # Capped at 64 MiB so it also fits v7x physical VMEM.
    block_bytes = hb * wb * 4
    vmem_limit = int(min(64 << 20, max(32 << 20, 20 * block_bytes)))

    # TODO(synk): images beyond ~1.5-2k per side should be spatially tiled
    #             (1-px halo + merge passes) instead of whole-image blocks.
    out2d = pl.pallas_call(
        kernel,
        out_shape=jax.ShapeDtypeStruct((num_groups * hb, wb), jnp.int32),
        grid=(num_groups,),
        in_specs=[pl.BlockSpec((hb, wb), lambda g: (g, 0))],
        out_specs=pl.BlockSpec((hb, wb), lambda g: (g, 0)),
        compiler_params=pltpu.CompilerParams(
            dimension_semantics=("parallel",),       # independent image groups
            vmem_limit_bytes=vmem_limit),
    )(x2d)

    lbl = out2d.reshape(num_groups, hb, wb)[:, :, :n_lane * slot_w]
    lbl = lbl.reshape(num_groups, n_sub, slot_h, n_lane, slot_w)
    lbl = lbl.transpose(0, 1, 3, 2, 4).reshape(m_pad, slot_h, slot_w)
    return lbl[:M, :H, :W]


# -----------------------------------------------------------------------------
# Host-side (numpy) pieces — same as the reference, which runs these on
# .cpu().numpy() with skimage.  regionprops / greedy matching are inherently
# variable-length and data-dependent.
# -----------------------------------------------------------------------------
# TODO(synk): regionprops + greedy centroid matching have no clean fixed-shape
#             Pallas equivalent; kept on host exactly as the reference does.
#             Only data_dim=2 is implemented (3-D volumes not supported here).
def _region_props(lbl, min_size):
    props = []
    labels = np.unique(lbl)
    for L in labels[labels > 0]:          # ascending label == raster-scan order
        m = lbl == L
        area = int(m.sum())
        if area < min_size:
            continue
        rr, cc = np.nonzero(m)
        props.append({"area": area,
                      "centroid": (rr.mean(), cc.mean()),
                      "mask": m})
    return props


def _match_components(true_props, pred_props, tolerance):
    matches, used = [], set()
    for t_idx, t in enumerate(true_props):
        tx, ty = t["centroid"]
        best_d, best_i = float("inf"), None
        for p_idx, p in enumerate(pred_props):
            if p_idx in used:
                continue
            px, py = p["centroid"]
            d = np.hypot(tx - px, ty - py)
            if d <= tolerance and d < best_d:
                best_d, best_i = d, p_idx
        if best_i is not None:
            matches.append((t_idx, best_i))
            used.add(best_i)
    return matches


def ccq_forward(y_pred, y_true):
    """JAX/Pallas equivalent of ConnectedComponentsQuality.forward.

    y_pred, y_true: (B, 1, H, W) or (B, H, W). Returns scalar float32.
    """
    if y_pred.ndim == DATA_DIM + 1:
        y_pred = y_pred[:, None]
    if y_true.ndim == DATA_DIM + 1:
        y_true = y_true[:, None]
    if y_pred.shape != y_true.shape:
        raise ValueError(f"Shape mismatch: {y_pred.shape} vs {y_true.shape}")
    B, C = y_pred.shape[:2]
    if C != 1:
        raise ValueError(f"CCQ only supports binary masks; got C={C}")

    # Label pred and true images in a single Pallas call (stacked along batch).
    stacked = jnp.concatenate([y_pred[:, 0], y_true[:, 0]], axis=0)
    stacked = stacked.astype(jnp.float32)
    labels = np.asarray(jax.block_until_ready(connected_components_label(stacked)))
    pred_lbls, true_lbls = labels[:B], labels[B:]

    scores = []
    for b in range(B):
        pred_lbl, true_lbl = pred_lbls[b], true_lbls[b]

        if not (true_lbl > 0).any():
            scores.append(1.0 if not (pred_lbl > 0).any() else 0.0)
            continue

        true_props = _region_props(true_lbl, MIN_SIZE)
        pred_props = _region_props(pred_lbl, MIN_SIZE)

        if not true_props:
            scores.append(1.0 if not pred_props else 0.0)
            continue
        if not pred_props:
            scores.append(0.0)
            continue

        matches = _match_components(true_props, pred_props, TOLERANCE)
        tp = len(matches)
        fp = len(pred_props) - tp
        fn = len(true_props) - tp
        detection = tp / (tp + fp + fn + EPS)

        shape_scores = []
        for t_idx, p_idx in matches:
            t_mask = true_props[t_idx]["mask"]
            p_mask = pred_props[p_idx]["mask"]
            inter = np.logical_and(t_mask, p_mask).sum()
            union = np.logical_or(t_mask, p_mask).sum()
            shape_scores.append(inter / (union + EPS))
        shape = float(np.mean(shape_scores)) if shape_scores else 0.0

        scores.append(ALPHA * detection + (1 - ALPHA) * shape)

    return jnp.asarray(float(np.mean(scores)), dtype=jnp.float32)


# -----------------------------------------------------------------------------
if __name__ == "__main__":
    key = jax.random.PRNGKey(0)
    k1, k2 = jax.random.split(key)

    B, H, W = 2, 16, 16
    # layout: inputs are (B, 1, H, W) float32 (PyTorch NCHW with C=1)
    y_true = (jax.random.uniform(k1, (B, 1, H, W)) > 0.6).astype(jnp.float32)
    noise = jax.random.uniform(k2, (B, 1, H, W)) * 0.4
    y_pred = jnp.clip(y_true * 0.8 + noise, 0.0, 1.0)

    score = ccq_forward(y_pred, y_true)
    jax.block_until_ready(score)
    print("KERNEL_OK")
</pallas_src>

<mosaic_0001>
module attributes {stable_mosaic.version = 11 : i64} {
  func.func @_ccl_kernel(%arg0: i32, %arg1: memref<16x128xf32, #tpu.memory_space<vmem>>, %arg2: memref<16x128xi32, #tpu.memory_space<vmem>>) attributes {dimension_semantics = [#tpu.dimension_semantics<parallel>], iteration_bounds = array<i64: 1>, scalar_prefetch = 0 : i64, scratch_operands = 0 : i64, tpu.core_type = #tpu.core_type<tc>, window_params = [{transform_indices = @transform_0, window_bounds = array<i64: 16, 128>}, {transform_indices = @transform_1, window_bounds = array<i64: 16, 128>}]} {
    %c0 = arith.constant 0 : index
    %c0_0 = arith.constant 0 : index
    %0 = vector.load %arg1[%c0, %c0_0] : memref<16x128xf32, #tpu.memory_space<vmem>>, vector<16x128xf32>
    %cst = arith.constant 5.000000e-01 : f32
    %1 = vector.broadcast %cst : f32 to vector<16x128xf32>
    %2 = arith.cmpf ogt, %0, %1 : vector<16x128xf32>
    %3 = tpu.iota {dimensions = array<i32: 0>} : vector<16x128xi32>
    %4 = tpu.iota {dimensions = array<i32: 1>} : vector<16x128xi32>
    %c128_i32 = arith.constant 128 : i32
    %5 = vector.broadcast %c128_i32 : i32 to vector<16x128xi32>
    %6 = arith.muli %3, %5 : vector<16x128xi32>
    %7 = arith.addi %6, %4 : vector<16x128xi32>
    %c1_i32 = arith.constant 1 : i32
    %8 = vector.broadcast %c1_i32 : i32 to vector<16x128xi32>
    %9 = arith.addi %7, %8 : vector<16x128xi32>
    %c1073741824_i32 = arith.constant 1073741824 : i32
    %10 = vector.broadcast %c1073741824_i32 : i32 to vector<16x128xi32>
    %11 = arith.select %2, %9, %10 : vector<16x128xi1>, vector<16x128xi32>
    %12 = arith.extui %2 : vector<16x128xi1> to vector<16x128xi32>
    %c1_i32_1 = arith.constant 1 : i32
    %13 = vector.broadcast %c1_i32_1 : i32 to vector<16x128xi32>
    %14 = arith.cmpi sge, %4, %13 : vector<16x128xi32>
    %c1_i32_2 = arith.constant 1 : i32
    %15 = tpu.dynamic_rotate %12 by %c1_i32_2 dim 1 : vector<16x128xi32>, i32 -> vector<16x128xi32>
    %c0_i32 = arith.constant 0 : i32
    %16 = vector.broadcast %c0_i32 : i32 to vector<16x128xi32>
    %17 = arith.select %14, %15, %16 : vector<16x128xi1>, vector<16x128xi32>
    %c1_i32_3 = arith.constant 1 : i32
    %18 = vector.broadcast %c1_i32_3 : i32 to vector<16x128xi32>
    %19 = arith.cmpi sge, %4, %18 : vector<16x128xi32>
    %c2_i32 = arith.constant 2 : i32
    %20 = vector.broadcast %c2_i32 : i32 to vector<16x128xi32>
    %21 = arith.cmpi sge, %4, %20 : vector<16x128xi32>
    %c4_i32 = arith.constant 4 : i32
    %22 = vector.broadcast %c4_i32 : i32 to vector<16x128xi32>
    %23 = arith.cmpi sge, %4, %22 : vector<16x128xi32>
    %c8_i32 = arith.constant 8 : i32
    %24 = vector.broadcast %c8_i32 : i32 to vector<16x128xi32>
    %25 = arith.cmpi sge, %4, %24 : vector<16x128xi32>
    %c16_i32 = arith.constant 16 : i32
    %26 = vector.broadcast %c16_i32 : i32 to vector<16x128xi32>
    %27 = arith.cmpi sge, %4, %26 : vector<16x128xi32>
    %c32_i32 = arith.constant 32 : i32
    %28 = vector.broadcast %c32_i32 : i32 to vector<16x128xi32>
    %29 = arith.cmpi sge, %4, %28 : vector<16x128xi32>
    %c64_i32 = arith.constant 64 : i32
    %30 = vector.broadcast %c64_i32 : i32 to vector<16x128xi32>
    %31 = arith.cmpi sge, %4, %30 : vector<16x128xi32>
    %c1_i32_4 = arith.constant 1 : i32
    %32 = vector.broadcast %c1_i32_4 : i32 to vector<16x128xi32>
    %33 = arith.subi %32, %17 : vector<16x128xi32>
    %c0_i32_5 = arith.constant 0 : i32
    %34 = vector.broadcast %c0_i32_5 : i32 to vector<16x128xi32>
    %c0_i32_6 = arith.constant 0 : i32
    %35 = vector.broadcast %c0_i32_6 : i32 to vector<16x128xi32>
    %36 = arith.cmpi eq, %33, %35 : vector<16x128xi32>
    %37 = arith.andi %36, %19 : vector<16x128xi1>
    %38 = arith.extui %37 : vector<16x128xi1> to vector<16x128xi32>
    %c0_i32_7 = arith.constant 0 : i32
    %39 = vector.broadcast %c0_i32_7 : i32 to vector<16x128xi32>
    %40 = arith.shli %38, %39 : vector<16x128xi32>
    %41 = arith.ori %34, %40 : vector<16x128xi32>
    %c1_i32_8 = arith.constant 1 : i32
    %42 = tpu.dynamic_rotate %33 by %c1_i32_8 dim 1 : vector<16x128xi32>, i32 -> vector<16x128xi32>
    %c0_i32_9 = arith.constant 0 : i32
    %43 = vector.broadcast %c0_i32_9 : i32 to vector<16x128xi32>
    %44 = arith.select %19, %42, %43 : vector<16x128xi1>, vector<16x128xi32>
    %45 = arith.ori %33, %44 : vector<16x128xi32>
    %c0_i32_10 = arith.constant 0 : i32
    %46 = vector.broadcast %c0_i32_10 : i32 to vector<16x128xi32>
    %47 = arith.cmpi eq, %45, %46 : vector<16x128xi32>
    %48 = arith.andi %47, %21 : vector<16x128xi1>
    %49 = arith.extui %48 : vector<16x128xi1> to vector<16x128xi32>
    %c1_i32_11 = arith.constant 1 : i32
    %50 = vector.broadcast %c1_i32_11 : i32 to vector<16x128xi32>
    %51 = arith.shli %49, %50 : vector<16x128xi32>
    %52 = arith.ori %41, %51 : vector<16x128xi32>
    %c2_i32_12 = arith.constant 2 : i32
    %53 = tpu.dynamic_rotate %45 by %c2_i32_12 dim 1 : vector<16x128xi32>, i32 -> vector<16x128xi32>
    %c0_i32_13 = arith.constant 0 : i32
    %54 = vector.broadcast %c0_i32_13 : i32 to vector<16x128xi32>
    %55 = arith.select %21, %53, %54 : vector<16x128xi1>, vector<16x128xi32>
    %56 = arith.ori %45, %55 : vector<16x128xi32>
    %c0_i32_14 = arith.constant 0 : i32
    %57 = vector.broadcast %c0_i32_14 : i32 to vector<16x128xi32>
    %58 = arith.cmpi eq, %56, %57 : vector<16x128xi32>
    %59 = arith.andi %58, %23 : vector<16x128xi1>
    %60 = arith.extui %59 : vector<16x128xi1> to vector<16x128xi32>
    %c2_i32_15 = arith.constant 2 : i32
    %61 = vector.broadcast %c2_i32_15 : i32 to vector<16x128xi32>
    %62 = arith.shli %60, %61 : vector<16x128xi32>
    %63 = arith.ori %52, %62 : vector<16x128xi32>
    %c4_i32_16 = arith.constant 4 : i32
    %64 = tpu.dynamic_rotate %56 by %c4_i32_16 dim 1 : vector<16x128xi32>, i32 -> vector<16x128xi32>
    %c0_i32_17 = arith.constant 0 : i32
    %65 = vector.broadcast %c0_i32_17 : i32 to vector<16x128xi32>
    %66 = arith.select %23, %64, %65 : vector<16x128xi1>, vector<16x128xi32>
    %67 = arith.ori %56, %66 : vector<16x128xi32>
    %c0_i32_18 = arith.constant 0 : i32
    %68 = vector.broadcast %c0_i32_18 : i32 to vector<16x128xi32>
    %69 = arith.cmpi eq, %67, %68 : vector<16x128xi32>
    %70 = arith.andi %69, %25 : vector<16x128xi1>
    %71 = arith.extui %70 : vector<16x128xi1> to vector<16x128xi32>
    %c3_i32 = arith.constant 3 : i32
    %72 = vector.broadcast %c3_i32 : i32 to vector<16x128xi32>
    %73 = arith.shli %71, %72 : vector<16x128xi32>
    %74 = arith.ori %63, %73 : vector<16x128xi32>
    %c8_i32_19 = arith.constant 8 : i32
    %75 = tpu.dynamic_rotate %67 by %c8_i32_19 dim 1 : vector<16x128xi32>, i32 -> vector<16x128xi32>
    %c0_i32_20 = arith.constant 0 : i32
    %76 = vector.broadcast %c0_i32_20 : i32 to vector<16x128xi32>
    %77 = arith.select %25, %75, %76 : vector<16x128xi1>, vector<16x128xi32>
    %78 = arith.ori %67, %77 : vector<16x128xi32>
    %c0_i32_21 = arith.constant 0 : i32
    %79 = vector.broadcast %c0_i32_21 : i32 to vector<16x128xi32>
    %80 = arith.cmpi eq, %78, %79 : vector<16x128xi32>
    %81 = arith.andi %80, %27 : vector<16x128xi1>
    %82 = arith.extui %81 : vector<16x128xi1> to vector<16x128xi32>
    %c4_i32_22 = arith.constant 4 : i32
    %83 = vector.broadcast %c4_i32_22 : i32 to vector<16x128xi32>
    %84 = arith.shli %82, %83 : vector<16x128xi32>
    %85 = arith.ori %74, %84 : vector<16x128xi32>
    %c16_i32_23 = arith.constant 16 : i32
    %86 = tpu.dynamic_rotate %78 by %c16_i32_23 dim 1 : vector<16x128xi32>, i32 -> vector<16x128xi32>
    %c0_i32_24 = arith.constant 0 : i32
    %87 = vector.broadcast %c0_i32_24 : i32 to vector<16x128xi32>
    %88 = arith.select %27, %86, %87 : vector<16x128xi1>, vector<16x128xi32>
    %89 = arith.ori %78, %88 : vector<16x128xi32>
    %c0_i32_25 = arith.constant 0 : i32
    %90 = vector.broadcast %c0_i32_25 : i32 to vector<16x128xi32>
    %91 = arith.cmpi eq, %89, %90 : vector<16x128xi32>
    %92 = arith.andi %91, %29 : vector<16x128xi1>
    %93 = arith.extui %92 : vector<16x128xi1> to vector<16x128xi32>
    %c5_i32 = arith.constant 5 : i32
    %94 = vector.broadcast %c5_i32 : i32 to vector<16x128xi32>
    %95 = arith.shli %93, %94 : vector<16x128xi32>
    %96 = arith.ori %85, %95 : vector<16x128xi32>
    %c32_i32_26 = arith.constant 32 : i32
    %97 = tpu.dynamic_rotate %89 by %c32_i32_26 dim 1 : vector<16x128xi32>, i32 -> vector<16x128xi32>
    %c0_i32_27 = arith.constant 0 : i32
    %98 = vector.broadcast %c0_i32_27 : i32 to vector<16x128xi32>
    %99 = arith.select %29, %97, %98 : vector<16x128xi1>, vector<16x128xi32>
    %100 = arith.ori %89, %99 : vector<16x128xi32>
    %c0_i32_28 = arith.constant 0 : i32
    %101 = vector.broadcast %c0_i32_28 : i32 to vector<16x128xi32>
    %102 = arith.cmpi eq, %100, %101 : vector<16x128xi32>
    %103 = arith.andi %102, %31 : vector<16x128xi1>
    %104 = arith.extui %103 : vector<16x128xi1> to vector<16x128xi32>
    %c6_i32 = arith.constant 6 : i32
    %105 = vector.broadcast %c6_i32 : i32 to vector<16x128xi32>
    %106 = arith.shli %104, %105 : vector<16x128xi32>
    %107 = arith.ori %96, %106 : vector<16x128xi32>
    %c126_i32 = arith.constant 126 : i32
    %108 = vector.broadcast %c126_i32 : i32 to vector<16x128xi32>
    %109 = arith.cmpi sle, %4, %108 : vector<16x128xi32>
    %c127_i32 = arith.constant 127 : i32
    %110 = tpu.dynamic_rotate %12 by %c127_i32 dim 1 : vector<16x128xi32>, i32 -> vector<16x128xi32>
    %c0_i32_29 = arith.constant 0 : i32
    %111 = vector.broadcast %c0_i32_29 : i32 to vector<16x128xi32>
    %112 = arith.select %109, %110, %111 : vector<16x128xi1>, vector<16x128xi32>
    %c127_i32_30 = arith.constant 127 : i32
    %113 = vector.broadcast %c127_i32_30 : i32 to vector<16x128xi32>
    %114 = arith.cmpi slt, %4, %113 : vector<16x128xi32>
    %c126_i32_31 = arith.constant 126 : i32
    %115 = vector.broadcast %c126_i32_31 : i32 to vector<16x128xi32>
    %116 = arith.cmpi slt, %4, %115 : vector<16x128xi32>
    %c124_i32 = arith.constant 124 : i32
    %117 = vector.broadcast %c124_i32 : i32 to vector<16x128xi32>
    %118 = arith.cmpi slt, %4, %117 : vector<16x128xi32>
    %c120_i32 = arith.constant 120 : i32
    %119 = vector.broadcast %c120_i32 : i32 to vector<16x128xi32>
    %120 = arith.cmpi slt, %4, %119 : vector<16x128xi32>
    %c112_i32 = arith.constant 112 : i32
    %121 = vector.broadcast %c112_i32 : i32 to vector<16x128xi32>
    %122 = arith.cmpi slt, %4, %121 : vector<16x128xi32>
    %c96_i32 = arith.constant 96 : i32
    %123 = vector.broadcast %c96_i32 : i32 to vector<16x128xi32>
    %124 = arith.cmpi slt, %4, %123 : vector<16x128xi32>
    %c64_i32_32 = arith.constant 64 : i32
    %125 = vector.broadcast %c64_i32_32 : i32 to vector<16x128xi32>
    %126 = arith.cmpi slt, %4, %125 : vector<16x128xi32>
    %c1_i32_33 = arith.constant 1 : i32
    %127 = vector.broadcast %c1_i32_33 : i32 to vector<16x128xi32>
    %128 = arith.subi %127, %112 : vector<16x128xi32>
    %c0_i32_34 = arith.constant 0 : i32
    %129 = vector.broadcast %c0_i32_34 : i32 to vector<16x128xi32>
    %c0_i32_35 = arith.constant 0 : i32
    %130 = vector.broadcast %c0_i32_35 : i32 to vector<16x128xi32>
    %131 = arith.cmpi eq, %128, %130 : vector<16x128xi32>
    %132 = arith.andi %131, %114 : vector<16x128xi1>
    %133 = arith.extui %132 : vector<16x128xi1> to vector<16x128xi32>
    %c0_i32_36 = arith.constant 0 : i32
    %134 = vector.broadcast %c0_i32_36 : i32 to vector<16x128xi32>
    %135 = arith.shli %133, %134 : vector<16x128xi32>
    %136 = arith.ori %129, %135 : vector<16x128xi32>
    %c127_i32_37 = arith.constant 127 : i32
    %137 = tpu.dynamic_rotate %128 by %c127_i32_37 dim 1 : vector<16x128xi32>, i32 -> vector<16x128xi32>
    %c0_i32_38 = arith.constant 0 : i32
    %138 = vector.broadcast %c0_i32_38 : i32 to vector<16x128xi32>
    %139 = arith.select %114, %137, %138 : vector<16x128xi1>, vector<16x128xi32>
    %140 = arith.ori %128, %139 : vector<16x128xi32>
    %c0_i32_39 = arith.constant 0 : i32
    %141 = vector.broadcast %c0_i32_39 : i32 to vector<16x128xi32>
    %142 = arith.cmpi eq, %140, %141 : vector<16x128xi32>
    %143 = arith.andi %142, %116 : vector<16x128xi1>
    %144 = arith.extui %143 : vector<16x128xi1> to vector<16x128xi32>
    %c1_i32_40 = arith.constant 1 : i32
    %145 = vector.broadcast %c1_i32_40 : i32 to vector<16x128xi32>
    %146 = arith.shli %144, %145 : vector<16x128xi32>
    %147 = arith.ori %136, %146 : vector<16x128xi32>
    %c126_i32_41 = arith.constant 126 : i32
    %148 = tpu.dynamic_rotate %140 by %c126_i32_41 dim 1 : vector<16x128xi32>, i32 -> vector<16x128xi32>
    %c0_i32_42 = arith.constant 0 : i32
    %149 = vector.broadcast %c0_i32_42 : i32 to vector<16x128xi32>
    %150 = arith.select %116, %148, %149 : vector<16x128xi1>, vector<16x128xi32>
    %151 = arith.ori %140, %150 : vector<16x128xi32>
    %c0_i32_43 = arith.constant 0 : i32
    %152 = vector.broadcast %c0_i32_43 : i32 to vector<16x128xi32>
    %153 = arith.cmpi eq, %151, %152 : vector<16x128xi32>
    %154 = arith.andi %153, %118 : vector<16x128xi1>
    %155 = arith.extui %154 : vector<16x128xi1> to vector<16x128xi32>
    %c2_i32_44 = arith.constant 2 : i32
    %156 = vector.broadcast %c2_i32_44 : i32 to vector<16x128xi32>
    %157 = arith.shli %155, %156 : vector<16x128xi32>
    %158 = arith.ori %147, %157 : vector<16x128xi32>
    %c124_i32_45 = arith.constant 124 : i32
    %159 = tpu.dynamic_rotate %151 by %c124_i32_45 dim 1 : vector<16x128xi32>, i32 -> vector<16x128xi32>
    %c0_i32_46 = arith.constant 0 : i32
    %160 = vector.broadcast %c0_i32_46 : i32 to vector<16x128xi32>
    %161 = arith.select %118, %159, %160 : vector<16x128xi1>, vector<16x128xi32>
    %162 = arith.ori %151, %161 : vector<16x128xi32>
    %c0_i32_47 = arith.constant 0 : i32
    %163 = vector.broadcast %c0_i32_47 : i32 to vector<16x128xi32>
    %164 = arith.cmpi eq, %162, %163 : vector<16x128xi32>
    %165 = arith.andi %164, %120 : vector<16x128xi1>
    %166 = arith.extui %165 : vector<16x128xi1> to vector<16x128xi32>
    %c3_i32_48 = arith.constant 3 : i32
    %167 = vector.broadcast %c3_i32_48 : i32 to vector<16x128xi32>
    %168 = arith.shli %166, %167 : vector<16x128xi32>
    %169 = arith.ori %158, %168 : vector<16x128xi32>
    %c120_i32_49 = arith.constant 120 : i32
    %170 = tpu.dynamic_rotate %162 by %c120_i32_49 dim 1 : vector<16x128xi32>, i32 -> vector<16x128xi32>
    %c0_i32_50 = arith.constant 0 : i32
    %171 = vector.broadcast %c0_i32_50 : i32 to vector<16x128xi32>
    %172 = arith.select %120, %170, %171 : vector<16x128xi1>, vector<16x128xi32>
    %173 = arith.ori %162, %172 : vector<16x128xi32>
    %c0_i32_51 = arith.constant 0 : i32
    %174 = vector.broadcast %c0_i32_51 : i32 to vector<16x128xi32>
    %175 = arith.cmpi eq, %173, %174 : vector<16x128xi32>
    %176 = arith.andi %175, %122 : vector<16x128xi1>
    %177 = arith.extui %176 : vector<16x128xi1> to vector<16x128xi32>
    %c4_i32_52 = arith.constant 4 : i32
    %178 = vector.broadcast %c4_i32_52 : i32 to vector<16x128xi32>
    %179 = arith.shli %177, %178 : vector<16x128xi32>
    %180 = arith.ori %169, %179 : vector<16x128xi32>
    %c112_i32_53 = arith.constant 112 : i32
    %181 = tpu.dynamic_rotate %173 by %c112_i32_53 dim 1 : vector<16x128xi32>, i32 -> vector<16x128xi32>
    %c0_i32_54 = arith.constant 0 : i32
    %182 = vector.broadcast %c0_i32_54 : i32 to vector<16x128xi32>
    %183 = arith.select %122, %181, %182 : vector<16x128xi1>, vector<16x128xi32>
    %184 = arith.ori %173, %183 : vector<16x128xi32>
    %c0_i32_55 = arith.constant 0 : i32
    %185 = vector.broadcast %c0_i32_55 : i32 to vector<16x128xi32>
    %186 = arith.cmpi eq, %184, %185 : vector<16x128xi32>
    %187 = arith.andi %186, %124 : vector<16x128xi1>
    %188 = arith.extui %187 : vector<16x128xi1> to vector<16x128xi32>
    %c5_i32_56 = arith.constant 5 : i32
    %189 = vector.broadcast %c5_i32_56 : i32 to vector<16x128xi32>
    %190 = arith.shli %188, %189 : vector<16x128xi32>
    %191 = arith.ori %180, %190 : vector<16x128xi32>
    %c96_i32_57 = arith.constant 96 : i32
    %192 = tpu.dynamic_rotate %184 by %c96_i32_57 dim 1 : vector<16x128xi32>, i32 -> vector<16x128xi32>
    %c0_i32_58 = arith.constant 0 : i32
    %193 = vector.broadcast %c0_i32_58 : i32 to vector<16x128xi32>
    %194 = arith.select %124, %192, %193 : vector<16x128xi1>, vector<16x128xi32>
    %195 = arith.ori %184, %194 : vector<16x128xi32>
    %c0_i32_59 = arith.constant 0 : i32
    %196 = vector.broadcast %c0_i32_59 : i32 to vector<16x128xi32>
    %197 = arith.cmpi eq, %195, %196 : vector<16x128xi32>
    %198 = arith.andi %197, %126 : vector<16x128xi1>
    %199 = arith.extui %198 : vector<16x128xi1> to vector<16x128xi32>
    %c6_i32_60 = arith.constant 6 : i32
    %200 = vector.broadcast %c6_i32_60 : i32 to vector<16x128xi32>
    %201 = arith.shli %199, %200 : vector<16x128xi32>
    %202 = arith.ori %191, %201 : vector<16x128xi32>
    %c1_i32_61 = arith.constant 1 : i32
    %203 = vector.broadcast %c1_i32_61 : i32 to vector<16x128xi32>
    %204 = arith.cmpi sge, %3, %203 : vector<16x128xi32>
    %c1_i32_62 = arith.constant 1 : i32
    %205 = tpu.dynamic_rotate %12 by %c1_i32_62 dim 0 : vector<16x128xi32>, i32 -> vector<16x128xi32>
    %c0_i32_63 = arith.constant 0 : i32
    %206 = vector.broadcast %c0_i32_63 : i32 to vector<16x128xi32>
    %207 = arith.select %204, %205, %206 : vector<16x128xi1>, vector<16x128xi32>
    %c1_i32_64 = arith.constant 1 : i32
    %208 = vector.broadcast %c1_i32_64 : i32 to vector<16x128xi32>
    %209 = arith.cmpi sge, %3, %208 : vector<16x128xi32>
    %c2_i32_65 = arith.constant 2 : i32
    %210 = vector.broadcast %c2_i32_65 : i32 to vector<16x128xi32>
    %211 = arith.cmpi sge, %3, %210 : vector<16x128xi32>
    %c4_i32_66 = arith.constant 4 : i32
    %212 = vector.broadcast %c4_i32_66 : i32 to vector<16x128xi32>
    %213 = arith.cmpi sge, %3, %212 : vector<16x128xi32>
    %c8_i32_67 = arith.constant 8 : i32
    %214 = vector.broadcast %c8_i32_67 : i32 to vector<16x128xi32>
    %215 = arith.cmpi sge, %3, %214 : vector<16x128xi32>
    %c1_i32_68 = arith.constant 1 : i32
    %216 = vector.broadcast %c1_i32_68 : i32 to vector<16x128xi32>
    %217 = arith.subi %216, %207 : vector<16x128xi32>
    %c0_i32_69 = arith.constant 0 : i32
    %218 = vector.broadcast %c0_i32_69 : i32 to vector<16x128xi32>
    %c0_i32_70 = arith.constant 0 : i32
    %219 = vector.broadcast %c0_i32_70 : i32 to vector<16x128xi32>
    %220 = arith.cmpi eq, %217, %219 : vector<16x128xi32>
    %221 = arith.andi %220, %209 : vector<16x128xi1>
    %222 = arith.extui %221 : vector<16x128xi1> to vector<16x128xi32>
    %c0_i32_71 = arith.constant 0 : i32
    %223 = vector.broadcast %c0_i32_71 : i32 to vector<16x128xi32>
    %224 = arith.shli %222, %223 : vector<16x128xi32>
    %225 = arith.ori %218, %224 : vector<16x128xi32>
    %c1_i32_72 = arith.constant 1 : i32
    %226 = tpu.dynamic_rotate %217 by %c1_i32_72 dim 0 : vector<16x128xi32>, i32 -> vector<16x128xi32>
    %c0_i32_73 = arith.constant 0 : i32
    %227 = vector.broadcast %c0_i32_73 : i32 to vector<16x128xi32>
    %228 = arith.select %209, %226, %227 : vector<16x128xi1>, vector<16x128xi32>
    %229 = arith.ori %217, %228 : vector<16x128xi32>
    %c0_i32_74 = arith.constant 0 : i32
    %230 = vector.broadcast %c0_i32_74 : i32 to vector<16x128xi32>
    %231 = arith.cmpi eq, %229, %230 : vector<16x128xi32>
    %232 = arith.andi %231, %211 : vector<16x128xi1>
    %233 = arith.extui %232 : vector<16x128xi1> to vector<16x128xi32>
    %c1_i32_75 = arith.constant 1 : i32
    %234 = vector.broadcast %c1_i32_75 : i32 to vector<16x128xi32>
    %235 = arith.shli %233, %234 : vector<16x128xi32>
    %236 = arith.ori %225, %235 : vector<16x128xi32>
    %c2_i32_76 = arith.constant 2 : i32
    %237 = tpu.dynamic_rotate %229 by %c2_i32_76 dim 0 : vector<16x128xi32>, i32 -> vector<16x128xi32>
    %c0_i32_77 = arith.constant 0 : i32
    %238 = vector.broadcast %c0_i32_77 : i32 to vector<16x128xi32>
    %239 = arith.select %211, %237, %238 : vector<16x128xi1>, vector<16x128xi32>
    %240 = arith.ori %229, %239 : vector<16x128xi32>
    %c0_i32_78 = arith.constant 0 : i32
    %241 = vector.broadcast %c0_i32_78 : i32 to vector<16x128xi32>
    %242 = arith.cmpi eq, %240, %241 : vector<16x128xi32>
    %243 = arith.andi %242, %213 : vector<16x128xi1>
    %244 = arith.extui %243 : vector<16x128xi1> to vector<16x128xi32>
    %c2_i32_79 = arith.constant 2 : i32
    %245 = vector.broadcast %c2_i32_79 : i32 to vector<16x128xi32>
    %246 = arith.shli %244, %245 : vector<16x128xi32>
    %247 = arith.ori %236, %246 : vector<16x128xi32>
    %c4_i32_80 = arith.constant 4 : i32
    %248 = tpu.dynamic_rotate %240 by %c4_i32_80 dim 0 : vector<16x128xi32>, i32 -> vector<16x128xi32>
    %c0_i32_81 = arith.constant 0 : i32
    %249 = vector.broadcast %c0_i32_81 : i32 to vector<16x128xi32>
    %250 = arith.select %213, %248, %249 : vector<16x128xi1>, vector<16x128xi32>
    %251 = arith.ori %240, %250 : vector<16x128xi32>
    %c0_i32_82 = arith.constant 0 : i32
    %252 = vector.broadcast %c0_i32_82 : i32 to vector<16x128xi32>
    %253 = arith.cmpi eq, %251, %252 : vector<16x128xi32>
    %254 = arith.andi %253, %215 : vector<16x128xi1>
    %255 = arith.extui %254 : vector<16x128xi1> to vector<16x128xi32>
    %c3_i32_83 = arith.constant 3 : i32
    %256 = vector.broadcast %c3_i32_83 : i32 to vector<16x128xi32>
    %257 = arith.shli %255, %256 : vector<16x128xi32>
    %258 = arith.ori %247, %257 : vector<16x128xi32>
    %c14_i32 = arith.constant 14 : i32
    %259 = vector.broadcast %c14_i32 : i32 to vector<16x128xi32>
    %260 = arith.cmpi sle, %3, %259 : vector<16x128xi32>
    %c15_i32 = arith.constant 15 : i32
    %261 = tpu.dynamic_rotate %12 by %c15_i32 dim 0 : vector<16x128xi32>, i32 -> vector<16x128xi32>
    %c0_i32_84 = arith.constant 0 : i32
    %262 = vector.broadcast %c0_i32_84 : i32 to vector<16x128xi32>
    %263 = arith.select %260, %261, %262 : vector<16x128xi1>, vector<16x128xi32>
    %c15_i32_85 = arith.constant 15 : i32
    %264 = vector.broadcast %c15_i32_85 : i32 to vector<16x128xi32>
    %265 = arith.cmpi slt, %3, %264 : vector<16x128xi32>
    %c14_i32_86 = arith.constant 14 : i32
    %266 = vector.broadcast %c14_i32_86 : i32 to vector<16x128xi32>
    %267 = arith.cmpi slt, %3, %266 : vector<16x128xi32>
    %c12_i32 = arith.constant 12 : i32
    %268 = vector.broadcast %c12_i32 : i32 to vector<16x128xi32>
    %269 = arith.cmpi slt, %3, %268 : vector<16x128xi32>
    %c8_i32_87 = arith.constant 8 : i32
    %270 = vector.broadcast %c8_i32_87 : i32 to vector<16x128xi32>
    %271 = arith.cmpi slt, %3, %270 : vector<16x128xi32>
    %c1_i32_88 = arith.constant 1 : i32
    %272 = vector.broadcast %c1_i32_88 : i32 to vector<16x128xi32>
    %273 = arith.subi %272, %263 : vector<16x128xi32>
    %c0_i32_89 = arith.constant 0 : i32
    %274 = vector.broadcast %c0_i32_89 : i32 to vector<16x128xi32>
    %c0_i32_90 = arith.constant 0 : i32
    %275 = vector.broadcast %c0_i32_90 : i32 to vector<16x128xi32>
    %276 = arith.cmpi eq, %273, %275 : vector<16x128xi32>
    %277 = arith.andi %276, %265 : vector<16x128xi1>
    %278 = arith.extui %277 : vector<16x128xi1> to vector<16x128xi32>
    %c0_i32_91 = arith.constant 0 : i32
    %279 = vector.broadcast %c0_i32_91 : i32 to vector<16x128xi32>
    %280 = arith.shli %278, %279 : vector<16x128xi32>
    %281 = arith.ori %274, %280 : vector<16x128xi32>
    %c15_i32_92 = arith.constant 15 : i32
    %282 = tpu.dynamic_rotate %273 by %c15_i32_92 dim 0 : vector<16x128xi32>, i32 -> vector<16x128xi32>
    %c0_i32_93 = arith.constant 0 : i32
    %283 = vector.broadcast %c0_i32_93 : i32 to vector<16x128xi32>
    %284 = arith.select %265, %282, %283 : vector<16x128xi1>, vector<16x128xi32>
    %285 = arith.ori %273, %284 : vector<16x128xi32>
    %c0_i32_94 = arith.constant 0 : i32
    %286 = vector.broadcast %c0_i32_94 : i32 to vector<16x128xi32>
    %287 = arith.cmpi eq, %285, %286 : vector<16x128xi32>
    %288 = arith.andi %287, %267 : vector<16x128xi1>
    %289 = arith.extui %288 : vector<16x128xi1> to vector<16x128xi32>
    %c1_i32_95 = arith.constant 1 : i32
    %290 = vector.broadcast %c1_i32_95 : i32 to vector<16x128xi32>
    %291 = arith.shli %289, %290 : vector<16x128xi32>
    %292 = arith.ori %281, %291 : vector<16x128xi32>
    %c14_i32_96 = arith.constant 14 : i32
    %293 = tpu.dynamic_rotate %285 by %c14_i32_96 dim 0 : vector<16x128xi32>, i32 -> vector<16x128xi32>
    %c0_i32_97 = arith.constant 0 : i32
    %294 = vector.broadcast %c0_i32_97 : i32 to vector<16x128xi32>
    %295 = arith.select %267, %293, %294 : vector<16x128xi1>, vector<16x128xi32>
    %296 = arith.ori %285, %295 : vector<16x128xi32>
    %c0_i32_98 = arith.constant 0 : i32
    %297 = vector.broadcast %c0_i32_98 : i32 to vector<16x128xi32>
    %298 = arith.cmpi eq, %296, %297 : vector<16x128xi32>
    %299 = arith.andi %298, %269 : vector<16x128xi1>
    %300 = arith.extui %299 : vector<16x128xi1> to vector<16x128xi32>
    %c2_i32_99 = arith.constant 2 : i32
    %301 = vector.broadcast %c2_i32_99 : i32 to vector<16x128xi32>
    %302 = arith.shli %300, %301 : vector<16x128xi32>
    %303 = arith.ori %292, %302 : vector<16x128xi32>
    %c12_i32_100 = arith.constant 12 : i32
    %304 = tpu.dynamic_rotate %296 by %c12_i32_100 dim 0 : vector<16x128xi32>, i32 -> vector<16x128xi32>
    %c0_i32_101 = arith.constant 0 : i32
    %305 = vector.broadcast %c0_i32_101 : i32 to vector<16x128xi32>
    %306 = arith.select %269, %304, %305 : vector<16x128xi1>, vector<16x128xi32>
    %307 = arith.ori %296, %306 : vector<16x128xi32>
    %c0_i32_102 = arith.constant 0 : i32
    %308 = vector.broadcast %c0_i32_102 : i32 to vector<16x128xi32>
    %309 = arith.cmpi eq, %307, %308 : vector<16x128xi32>
    %310 = arith.andi %309, %271 : vector<16x128xi1>
    %311 = arith.extui %310 : vector<16x128xi1> to vector<16x128xi32>
    %c3_i32_103 = arith.constant 3 : i32
    %312 = vector.broadcast %c3_i32_103 : i32 to vector<16x128xi32>
    %313 = arith.shli %311, %312 : vector<16x128xi32>
    %314 = arith.ori %303, %313 : vector<16x128xi32>
    %c0_i32_104 = arith.constant 0 : i32
    %315 = vector.broadcast %c0_i32_104 : i32 to vector<16x128xi32>
    %316 = arith.cmpi sgt, %3, %315 : vector<16x128xi32>
    %c15_i32_105 = arith.constant 15 : i32
    %317 = vector.broadcast %c15_i32_105 : i32 to vector<16x128xi32>
    %318 = arith.cmpi slt, %3, %317 : vector<16x128xi32>
    %c0_i32_106 = arith.constant 0 : i32
    %319 = vector.broadcast %c0_i32_106 : i32 to vector<16x128xi32>
    %320 = arith.cmpi sgt, %4, %319 : vector<16x128xi32>
    %c127_i32_107 = arith.constant 127 : i32
    %321 = vector.broadcast %c127_i32_107 : i32 to vector<16x128xi32>
    %322 = arith.cmpi slt, %4, %321 : vector<16x128xi32>
    %c1073741824_i32_108 = arith.constant 1073741824 : i32
    %c0_i32_109 = arith.constant 0 : i32
    %true = arith.constant true
    %323:3 = scf.while (%arg3 = %c0_i32_109, %arg4 = %11, %arg5 = %true) : (i32, vector<16x128xi32>, i1) -> (i32, vector<16x128xi32>, i1) {
      %c2048_i32 = arith.constant 2048 : i32
      %327 = arith.cmpi slt, %arg3, %c2048_i32 : i32
      %328 = arith.andi %arg5, %327 : i1
      scf.condition(%328) %arg3, %arg4, %arg5 : i32, vector<16x128xi32>, i1
    } do {
    ^bb0(%arg3: i32, %arg4: vector<16x128xi32>, %arg5: i1):
      %c1_i32_113 = arith.constant 1 : i32
      %327 = vector.broadcast %c1_i32_113 : i32 to vector<16x128xi32>
      %328 = arith.andi %107, %327 : vector<16x128xi32>
      %c0_i32_114 = arith.constant 0 : i32
      %329 = vector.broadcast %c0_i32_114 : i32 to vector<16x128xi32>
      %330 = arith.cmpi ne, %328, %329 : vector<16x128xi32>
      %c1_i32_115 = arith.constant 1 : i32
      %331 = tpu.dynamic_rotate %arg4 by %c1_i32_115 dim 1 : vector<16x128xi32>, i32 -> vector<16x128xi32>
      %332 = arith.minsi %arg4, %331 : vector<16x128xi32>
      %333 = arith.select %330, %332, %arg4 : vector<16x128xi1>, vector<16x128xi32>
      %c2_i32_116 = arith.constant 2 : i32
      %334 = vector.broadcast %c2_i32_116 : i32 to vector<16x128xi32>
      %335 = arith.andi %107, %334 : vector<16x128xi32>
      %c0_i32_117 = arith.constant 0 : i32
      %336 = vector.broadcast %c0_i32_117 : i32 to vector<16x128xi32>
      %337 = arith.cmpi ne, %335, %336 : vector<16x128xi32>
      %c2_i32_118 = arith.constant 2 : i32
      %338 = tpu.dynamic_rotate %333 by %c2_i32_118 dim 1 : vector<16x128xi32>, i32 -> vector<16x128xi32>
      %339 = arith.minsi %333, %338 : vector<16x128xi32>
      %340 = arith.select %337, %339, %333 : vector<16x128xi1>, vector<16x128xi32>
      %c4_i32_119 = arith.constant 4 : i32
      %341 = vector.broadcast %c4_i32_119 : i32 to vector<16x128xi32>
      %342 = arith.andi %107, %341 : vector<16x128xi32>
      %c0_i32_120 = arith.constant 0 : i32
      %343 = vector.broadcast %c0_i32_120 : i32 to vector<16x128xi32>
      %344 = arith.cmpi ne, %342, %343 : vector<16x128xi32>
      %c4_i32_121 = arith.constant 4 : i32
      %345 = tpu.dynamic_rotate %340 by %c4_i32_121 dim 1 : vector<16x128xi32>, i32 -> vector<16x128xi32>
      %346 = arith.minsi %340, %345 : vector<16x128xi32>
      %347 = arith.select %344, %346, %340 : vector<16x128xi1>, vector<16x128xi32>
      %c8_i32_122 = arith.constant 8 : i32
      %348 = vector.broadcast %c8_i32_122 : i32 to vector<16x128xi32>
      %349 = arith.andi %107, %348 : vector<16x128xi32>
      %c0_i32_123 = arith.constant 0 : i32
      %350 = vector.broadcast %c0_i32_123 : i32 to vector<16x128xi32>
      %351 = arith.cmpi ne, %349, %350 : vector<16x128xi32>
      %c8_i32_124 = arith.constant 8 : i32
      %352 = tpu.dynamic_rotate %347 by %c8_i32_124 dim 1 : vector<16x128xi32>, i32 -> vector<16x128xi32>
      %353 = arith.minsi %347, %352 : vector<16x128xi32>
      %354 = arith.select %351, %353, %347 : vector<16x128xi1>, vector<16x128xi32>
      %c16_i32_125 = arith.constant 16 : i32
      %355 = vector.broadcast %c16_i32_125 : i32 to vector<16x128xi32>
      %356 = arith.andi %107, %355 : vector<16x128xi32>
      %c0_i32_126 = arith.constant 0 : i32
      %357 = vector.broadcast %c0_i32_126 : i32 to vector<16x128xi32>
      %358 = arith.cmpi ne, %356, %357 : vector<16x128xi32>
      %c16_i32_127 = arith.constant 16 : i32
      %359 = tpu.dynamic_rotate %354 by %c16_i32_127 dim 1 : vector<16x128xi32>, i32 -> vector<16x128xi32>
      %360 = arith.minsi %354, %359 : vector<16x128xi32>
      %361 = arith.select %358, %360, %354 : vector<16x128xi1>, vector<16x128xi32>
      %c32_i32_128 = arith.constant 32 : i32
      %362 = vector.broadcast %c32_i32_128 : i32 to vector<16x128xi32>
      %363 = arith.andi %107, %362 : vector<16x128xi32>
      %c0_i32_129 = arith.constant 0 : i32
      %364 = vector.broadcast %c0_i32_129 : i32 to vector<16x128xi32>
      %365 = arith.cmpi ne, %363, %364 : vector<16x128xi32>
      %c32_i32_130 = arith.constant 32 : i32
      %366 = tpu.dynamic_rotate %361 by %c32_i32_130 dim 1 : vector<16x128xi32>, i32 -> vector<16x128xi32>
      %367 = arith.minsi %361, %366 : vector<16x128xi32>
      %368 = arith.select %365, %367, %361 : vector<16x128xi1>, vector<16x128xi32>
      %c64_i32_131 = arith.constant 64 : i32
      %369 = vector.broadcast %c64_i32_131 : i32 to vector<16x128xi32>
      %370 = arith.andi %107, %369 : vector<16x128xi32>
      %c0_i32_132 = arith.constant 0 : i32
      %371 = vector.broadcast %c0_i32_132 : i32 to vector<16x128xi32>
      %372 = arith.cmpi ne, %370, %371 : vector<16x128xi32>
      %c64_i32_133 = arith.constant 64 : i32
      %373 = tpu.dynamic_rotate %368 by %c64_i32_133 dim 1 : vector<16x128xi32>, i32 -> vector<16x128xi32>
      %374 = arith.minsi %368, %373 : vector<16x128xi32>
      %375 = arith.select %372, %374, %368 : vector<16x128xi1>, vector<16x128xi32>
      %c1_i32_134 = arith.constant 1 : i32
      %376 = vector.broadcast %c1_i32_134 : i32 to vector<16x128xi32>
      %377 = arith.andi %202, %376 : vector<16x128xi32>
      %c0_i32_135 = arith.constant 0 : i32
      %378 = vector.broadcast %c0_i32_135 : i32 to vector<16x128xi32>
      %379 = arith.cmpi ne, %377, %378 : vector<16x128xi32>
      %c127_i32_136 = arith.constant 127 : i32
      %380 = tpu.dynamic_rotate %375 by %c127_i32_136 dim 1 : vector<16x128xi32>, i32 -> vector<16x128xi32>
      %381 = arith.minsi %375, %380 : vector<16x128xi32>
      %382 = arith.select %379, %381, %375 : vector<16x128xi1>, vector<16x128xi32>
      %c2_i32_137 = arith.constant 2 : i32
      %383 = vector.broadcast %c2_i32_137 : i32 to vector<16x128xi32>
      %384 = arith.andi %202, %383 : vector<16x128xi32>
      %c0_i32_138 = arith.constant 0 : i32
      %385 = vector.broadcast %c0_i32_138 : i32 to vector<16x128xi32>
      %386 = arith.cmpi ne, %384, %385 : vector<16x128xi32>
      %c126_i32_139 = arith.constant 126 : i32
      %387 = tpu.dynamic_rotate %382 by %c126_i32_139 dim 1 : vector<16x128xi32>, i32 -> vector<16x128xi32>
      %388 = arith.minsi %382, %387 : vector<16x128xi32>
      %389 = arith.select %386, %388, %382 : vector<16x128xi1>, vector<16x128xi32>
      %c4_i32_140 = arith.constant 4 : i32
      %390 = vector.broadcast %c4_i32_140 : i32 to vector<16x128xi32>
      %391 = arith.andi %202, %390 : vector<16x128xi32>
      %c0_i32_141 = arith.constant 0 : i32
      %392 = vector.broadcast %c0_i32_141 : i32 to vector<16x128xi32>
      %393 = arith.cmpi ne, %391, %392 : vector<16x128xi32>
      %c124_i32_142 = arith.constant 124 : i32
      %394 = tpu.dynamic_rotate %389 by %c124_i32_142 dim 1 : vector<16x128xi32>, i32 -> vector<16x128xi32>
      %395 = arith.minsi %389, %394 : vector<16x128xi32>
      %396 = arith.select %393, %395, %389 : vector<16x128xi1>, vector<16x128xi32>
      %c8_i32_143 = arith.constant 8 : i32
      %397 = vector.broadcast %c8_i32_143 : i32 to vector<16x128xi32>
      %398 = arith.andi %202, %397 : vector<16x128xi32>
      %c0_i32_144 = arith.constant 0 : i32
      %399 = vector.broadcast %c0_i32_144 : i32 to vector<16x128xi32>
      %400 = arith.cmpi ne, %398, %399 : vector<16x128xi32>
      %c120_i32_145 = arith.constant 120 : i32
      %401 = tpu.dynamic_rotate %396 by %c120_i32_145 dim 1 : vector<16x128xi32>, i32 -> vector<16x128xi32>
      %402 = arith.minsi %396, %401 : vector<16x128xi32>
      %403 = arith.select %400, %402, %396 : vector<16x128xi1>, vector<16x128xi32>
      %c16_i32_146 = arith.constant 16 : i32
      %404 = vector.broadcast %c16_i32_146 : i32 to vector<16x128xi32>
      %405 = arith.andi %202, %404 : vector<16x128xi32>
      %c0_i32_147 = arith.constant 0 : i32
      %406 = vector.broadcast %c0_i32_147 : i32 to vector<16x128xi32>
      %407 = arith.cmpi ne, %405, %406 : vector<16x128xi32>
      %c112_i32_148 = arith.constant 112 : i32
      %408 = tpu.dynamic_rotate %403 by %c112_i32_148 dim 1 : vector<16x128xi32>, i32 -> vector<16x128xi32>
      %409 = arith.minsi %403, %408 : vector<16x128xi32>
      %410 = arith.select %407, %409, %403 : vector<16x128xi1>, vector<16x128xi32>
      %c32_i32_149 = arith.constant 32 : i32
      %411 = vector.broadcast %c32_i32_149 : i32 to vector<16x128xi32>
      %412 = arith.andi %202, %411 : vector<16x128xi32>
      %c0_i32_150 = arith.constant 0 : i32
      %413 = vector.broadcast %c0_i32_150 : i32 to vector<16x128xi32>
      %414 = arith.cmpi ne, %412, %413 : vector<16x128xi32>
      %c96_i32_151 = arith.constant 96 : i32
      %415 = tpu.dynamic_rotate %410 by %c96_i32_151 dim 1 : vector<16x128xi32>, i32 -> vector<16x128xi32>
      %416 = arith.minsi %410, %415 : vector<16x128xi32>
      %417 = arith.select %414, %416, %410 : vector<16x128xi1>, vector<16x128xi32>
      %c64_i32_152 = arith.constant 64 : i32
      %418 = vector.broadcast %c64_i32_152 : i32 to vector<16x128xi32>
      %419 = arith.andi %202, %418 : vector<16x128xi32>
      %c0_i32_153 = arith.constant 0 : i32
      %420 = vector.broadcast %c0_i32_153 : i32 to vector<16x128xi32>
      %421 = arith.cmpi ne, %419, %420 : vector<16x128xi32>
      %c64_i32_154 = arith.constant 64 : i32
      %422 = tpu.dynamic_rotate %417 by %c64_i32_154 dim 1 : vector<16x128xi32>, i32 -> vector<16x128xi32>
      %423 = arith.minsi %417, %422 : vector<16x128xi32>
      %424 = arith.select %421, %423, %417 : vector<16x128xi1>, vector<16x128xi32>
      %c1_i32_155 = arith.constant 1 : i32
      %425 = vector.broadcast %c1_i32_155 : i32 to vector<16x128xi32>
      %426 = arith.andi %258, %425 : vector<16x128xi32>
      %c0_i32_156 = arith.constant 0 : i32
      %427 = vector.broadcast %c0_i32_156 : i32 to vector<16x128xi32>
      %428 = arith.cmpi ne, %426, %427 : vector<16x128xi32>
      %c1_i32_157 = arith.constant 1 : i32
      %429 = tpu.dynamic_rotate %424 by %c1_i32_157 dim 0 : vector<16x128xi32>, i32 -> vector<16x128xi32>
      %430 = arith.minsi %424, %429 : vector<16x128xi32>
      %431 = arith.select %428, %430, %424 : vector<16x128xi1>, vector<16x128xi32>
      %c2_i32_158 = arith.constant 2 : i32
      %432 = vector.broadcast %c2_i32_158 : i32 to vector<16x128xi32>
      %433 = arith.andi %258, %432 : vector<16x128xi32>
      %c0_i32_159 = arith.constant 0 : i32
      %434 = vector.broadcast %c0_i32_159 : i32 to vector<16x128xi32>
      %435 = arith.cmpi ne, %433, %434 : vector<16x128xi32>
      %c2_i32_160 = arith.constant 2 : i32
      %436 = tpu.dynamic_rotate %431 by %c2_i32_160 dim 0 : vector<16x128xi32>, i32 -> vector<16x128xi32>
      %437 = arith.minsi %431, %436 : vector<16x128xi32>
      %438 = arith.select %435, %437, %431 : vector<16x128xi1>, vector<16x128xi32>
      %c4_i32_161 = arith.constant 4 : i32
      %439 = vector.broadcast %c4_i32_161 : i32 to vector<16x128xi32>
      %440 = arith.andi %258, %439 : vector<16x128xi32>
      %c0_i32_162 = arith.constant 0 : i32
      %441 = vector.broadcast %c0_i32_162 : i32 to vector<16x128xi32>
      %442 = arith.cmpi ne, %440, %441 : vector<16x128xi32>
      %c4_i32_163 = arith.constant 4 : i32
      %443 = tpu.dynamic_rotate %438 by %c4_i32_163 dim 0 : vector<16x128xi32>, i32 -> vector<16x128xi32>
      %444 = arith.minsi %438, %443 : vector<16x128xi32>
      %445 = arith.select %442, %444, %438 : vector<16x128xi1>, vector<16x128xi32>
      %c8_i32_164 = arith.constant 8 : i32
      %446 = vector.broadcast %c8_i32_164 : i32 to vector<16x128xi32>
      %447 = arith.andi %258, %446 : vector<16x128xi32>
      %c0_i32_165 = arith.constant 0 : i32
      %448 = vector.broadcast %c0_i32_165 : i32 to vector<16x128xi32>
      %449 = arith.cmpi ne, %447, %448 : vector<16x128xi32>
      %c8_i32_166 = arith.constant 8 : i32
      %450 = tpu.dynamic_rotate %445 by %c8_i32_166 dim 0 : vector<16x128xi32>, i32 -> vector<16x128xi32>
      %451 = arith.minsi %445, %450 : vector<16x128xi32>
      %452 = arith.select %449, %451, %445 : vector<16x128xi1>, vector<16x128xi32>
      %c1_i32_167 = arith.constant 1 : i32
      %453 = vector.broadcast %c1_i32_167 : i32 to vector<16x128xi32>
      %454 = arith.andi %314, %453 : vector<16x128xi32>
      %c0_i32_168 = arith.constant 0 : i32
      %455 = vector.broadcast %c0_i32_168 : i32 to vector<16x128xi32>
      %456 = arith.cmpi ne, %454, %455 : vector<16x128xi32>
      %c15_i32_169 = arith.constant 15 : i32
      %457 = tpu.dynamic_rotate %452 by %c15_i32_169 dim 0 : vector<16x128xi32>, i32 -> vector<16x128xi32>
      %458 = arith.minsi %452, %457 : vector<16x128xi32>
      %459 = arith.select %456, %458, %452 : vector<16x128xi1>, vector<16x128xi32>
      %c2_i32_170 = arith.constant 2 : i32
      %460 = vector.broadcast %c2_i32_170 : i32 to vector<16x128xi32>
      %461 = arith.andi %314, %460 : vector<16x128xi32>
      %c0_i32_171 = arith.constant 0 : i32
      %462 = vector.broadcast %c0_i32_171 : i32 to vector<16x128xi32>
      %463 = arith.cmpi ne, %461, %462 : vector<16x128xi32>
      %c14_i32_172 = arith.constant 14 : i32
      %464 = tpu.dynamic_rotate %459 by %c14_i32_172 dim 0 : vector<16x128xi32>, i32 -> vector<16x128xi32>
      %465 = arith.minsi %459, %464 : vector<16x128xi32>
      %466 = arith.select %463, %465, %459 : vector<16x128xi1>, vector<16x128xi32>
      %c4_i32_173 = arith.constant 4 : i32
      %467 = vector.broadcast %c4_i32_173 : i32 to vector<16x128xi32>
      %468 = arith.andi %314, %467 : vector<16x128xi32>
      %c0_i32_174 = arith.constant 0 : i32
      %469 = vector.broadcast %c0_i32_174 : i32 to vector<16x128xi32>
      %470 = arith.cmpi ne, %468, %469 : vector<16x128xi32>
      %c12_i32_175 = arith.constant 12 : i32
      %471 = tpu.dynamic_rotate %466 by %c12_i32_175 dim 0 : vector<16x128xi32>, i32 -> vector<16x128xi32>
      %472 = arith.minsi %466, %471 : vector<16x128xi32>
      %473 = arith.select %470, %472, %466 : vector<16x128xi1>, vector<16x128xi32>
      %c8_i32_176 = arith.constant 8 : i32
      %474 = vector.broadcast %c8_i32_176 : i32 to vector<16x128xi32>
      %475 = arith.andi %314, %474 : vector<16x128xi32>
      %c0_i32_177 = arith.constant 0 : i32
      %476 = vector.broadcast %c0_i32_177 : i32 to vector<16x128xi32>
      %477 = arith.cmpi ne, %475, %476 : vector<16x128xi32>
      %c8_i32_178 = arith.constant 8 : i32
      %478 = tpu.dynamic_rotate %473 by %c8_i32_178 dim 0 : vector<16x128xi32>, i32 -> vector<16x128xi32>
      %479 = arith.minsi %473, %478 : vector<16x128xi32>
      %480 = arith.select %477, %479, %473 : vector<16x128xi1>, vector<16x128xi32>
      %481 = vector.broadcast %c1073741824_i32_108 : i32 to vector<16x128xi32>
      %482 = arith.select %2, %480, %481 : vector<16x128xi1>, vector<16x128xi32>
      %c1_i32_179 = arith.constant 1 : i32
      %483 = tpu.dynamic_rotate %482 by %c1_i32_179 dim 0 : vector<16x128xi32>, i32 -> vector<16x128xi32>
      %484 = vector.broadcast %c1073741824_i32_108 : i32 to vector<16x128xi32>
      %485 = arith.select %316, %483, %484 : vector<16x128xi1>, vector<16x128xi32>
      %c15_i32_180 = arith.constant 15 : i32
      %486 = tpu.dynamic_rotate %482 by %c15_i32_180 dim 0 : vector<16x128xi32>, i32 -> vector<16x128xi32>
      %487 = vector.broadcast %c1073741824_i32_108 : i32 to vector<16x128xi32>
      %488 = arith.select %318, %486, %487 : vector<16x128xi1>, vector<16x128xi32>
      %489 = arith.minsi %485, %488 : vector<16x128xi32>
      %490 = arith.minsi %482, %489 : vector<16x128xi32>
      %c1_i32_181 = arith.constant 1 : i32
      %491 = tpu.dynamic_rotate %490 by %c1_i32_181 dim 1 : vector<16x128xi32>, i32 -> vector<16x128xi32>
      %492 = vector.broadcast %c1073741824_i32_108 : i32 to vector<16x128xi32>
      %493 = arith.select %320, %491, %492 : vector<16x128xi1>, vector<16x128xi32>
      %c127_i32_182 = arith.constant 127 : i32
      %494 = tpu.dynamic_rotate %490 by %c127_i32_182 dim 1 : vector<16x128xi32>, i32 -> vector<16x128xi32>
      %495 = vector.broadcast %c1073741824_i32_108 : i32 to vector<16x128xi32>
      %496 = arith.select %322, %494, %495 : vector<16x128xi1>, vector<16x128xi32>
      %497 = arith.minsi %493, %496 : vector<16x128xi32>
      %498 = arith.minsi %490, %497 : vector<16x128xi32>
      %499 = vector.broadcast %c1073741824_i32_108 : i32 to vector<16x128xi32>
      %500 = arith.select %2, %498, %499 : vector<16x128xi1>, vector<16x128xi32>
      %c1_i32_183 = arith.constant 1 : i32
      %501 = arith.addi %arg3, %c1_i32_183 : i32
      %502 = arith.subi %arg4, %500 : vector<16x128xi32>
      %503 = vector.shape_cast %502 : vector<16x128xi32> to vector<1x16x128xi32>
      %cst_184 = arith.constant dense<-2147483648> : vector<1xi32>
      %504 = vector.multi_reduction <maxsi>, %503, %cst_184 [1, 2] : vector<1x16x128xi32> to vector<1xi32>
      %505 = vector.shape_cast %504 : vector<1xi32> to vector<1x1x1xi32>
      %506 = vector.extract %505[0, 0, 0] : i32 from vector<1x1x1xi32>
      %c0_i32_185 = arith.constant 0 : i32
      %507 = arith.cmpi sgt, %506, %c0_i32_185 : i32
      scf.yield %501, %500, %507 : i32, vector<16x128xi32>, i1
    }
    %c0_i32_110 = arith.constant 0 : i32
    %324 = vector.broadcast %c0_i32_110 : i32 to vector<16x128xi32>
    %325 = arith.select %2, %323#1, %324 : vector<16x128xi1>, vector<16x128xi32>
    %c0_111 = arith.constant 0 : index
    %c0_112 = arith.constant 0 : index
    %326 = vector.load %arg2[%c0_111, %c0_112] : memref<16x128xi32, #tpu.memory_space<vmem>>, vector<16x128xi32>
    tpu.vector_store %arg2[%c0_111, %c0_112], %325 {strides = array<i32>} : memref<16x128xi32, #tpu.memory_space<vmem>>, vector<16x128xi32>,
    return
  }
  func.func @transform_0(%arg0: i32) -> (i32, i32) {
    %c0_i32 = arith.constant 0 : i32
    %c0_i32_0 = arith.constant 0 : i32
    return %arg0, %c0_i32 : i32, i32
  }
  func.func @transform_1(%arg0: i32) -> (i32, i32) {
    %c0_i32 = arith.constant 0 : i32
    %c0_i32_0 = arith.constant 0 : i32
    return %arg0, %c0_i32 : i32, i32
  }
}

</mosaic_0001>

<bundles_post_ra>
// kernel: connected_components_label.1
= control target key start
LH: loop header
LB: loop body
LE: loop exit
PB: predicated region body
PF: predicated region fallthrough
CT: control target
= control target key end

     0   :  { %v12_v0 = vlaneseq  ;;  %v925_v4 = vmov 0   ;;  %s926_s10 = smov 127   ;;  %s928_s11 = smov 2   ;;  %s1595_s0 = inlined_call_operand.vmem [shape: f32[16,128], index: 0, kind: input, shape index: {}]   ;;  %s1596_s1 = inlined_call_operand.vmem [shape: s32[16,128], index: 1, kind: output, shape index: {}]  }
   0x1   :  { %v964_v1 = vld [vmem:[%s1595_s0] sm:$0xff]  ;;  %v969_v2 = vld [vmem:[%s1595_s0 + $0x8] sm:$0xff]  ;;  %s927_s0 = smov 1   ;;  %s929_s12 = smov 126  }
   0x2   :  { %vm1599_vm0 = vcmp.gt.f32.partialorder %v964_v1, 0.5  ;;  %v972_v3 = vshrl.u32 %v12_v0, 7  ;;  %vm1597_vm1 = vcmp.gt.f32.partialorder %v969_v2, 0.5  ;;  %v978_v6 = vand.u32 127, %v12_v0  ;;  %s930_s13 = smov 4   ;;  %s931_s14 = smov 124  }
   0x3   :  { %v25_v5 = vsel %vm1599_vm0, 1, %v925_v4  ;;  %v26_v8 = vsel %vm1597_vm1, 1, %v925_v4  ;;  %s932_s15 = smov 8   ;;  %s933_s16 = smov 120  }
   0x4   :  { %v17_v7 = vmul.u32 128, %v972_v3  ;;  %157 = vrot.lane.b32.xlu1 %v25_v5, %s926_s10  ;;  %28 = vrot.lane.b32.xlu0 %v25_v5, %s927_s0  ;;  %v288_v9 = vrot.slane %v25_v5, 7  ;;  %v988_v10 = vadd.s32 8, %v972_v3  ;;  %v289_v11 = vrot.slane %v26_v8, 7  ;;  %s934_s17 = smov 16   ;;  %s935_s18 = smov 112  }
   0x5   :  { %v367_v13 = vrot.slane %v25_v5, 1  ;;  %vm1604_vm3 = vcmp.lt.s32.totalorder %v972_v3, 1  ;;  %v368_v15 = vrot.slane %v26_v8, 1  ;;  %vm286_vm4 = vcmp.ge.s32.totalorder %v972_v3, 1  ;;  %s936_s19 = smov 32   ;;  %s937_s20 = smov 96  }
   0x6   :  { %v19_v12 = vadd.s32 %v17_v7, %v978_v6  ;;  %v18_v14 = vmul.u32 128, %v988_v10  ;;  %vm1601_vm5 = vcmp.lt.s32.totalorder %v972_v3, 7  ;;  %vm366_vm6 = vcmp.le.s32.totalorder %v988_v10, 14  ;;  %s1449_s21 = smov 0  }
   0x7   :  { %v291_v18 = vsel %vm1604_vm3, %v288_v9, %v289_v11  ;;  %v292_v20 = vsel %vm1604_vm3, %v289_v11, %v288_v9  ;;  %v370_v22 = vsel %vm1601_vm5, %v367_v13, %v368_v15  ;;  %v371_v25 = vsel %vm1601_vm5, %v368_v15, %v367_v13 }
   0x8   :  { %v21_v16 = vadd.s32 1, %v19_v12  ;;  %v20_v17 = vadd.s32 %v18_v14, %v978_v6  ;;  %v302_v21 = vsub.s32 1, %v291_v18  ;;  %v293_v24 = vsel %vm286_vm4, %v292_v20, 0 }
   0x9   :  { %v382_v26 = vsub.s32 1, %v370_v22  ;;  %v301_v27 = vsub.s32 1, %v293_v24  ;;  %v373_v29 = vsel %vm366_vm6, %v371_v25, 0  ;;  %vm295_vm7 = vcmp.ge.s32.totalorder %v972_v3, 2 }
   0xa   :  { %v1001_v19 = vsel %vm1599_vm0, %v21_v16, 1073741824   ;;  %v22_v23 = vadd.s32 1, %v20_v17  ;;  %v310_v28 = vrot.slane %v302_v21, 7  ;;  %vm1603_vm8 = vcmp.lt.s32.totalorder %v972_v3, 2 }
   0xb   :  { %v383_v31 = vsub.s32 1, %v373_v29  ;;  %vm303_vm9 = vcmp.eq.s32.totalorder %v301_v27, 0  ;;  %vm304_vm10 = vcmp.eq.s32.totalorder %v302_v21, 0  ;;  %v309_v32 = vrot.slane %v301_v27, 7 }
   0xc   :  { %159 = vrot.lane.b32.xlu1 %v26_v8, %s926_s10  ;;  %30 = vrot.lane.b32.xlu0 %v26_v8, %s927_s0  ;;  %v1015_v30 = vsel %vm1597_vm1, %v22_v23, 1073741824   ;;  %v390_v33 = vrot.slane %v382_v26, 1  ;;  %vm1598_vm11 = vcmp.lt.s32.totalorder %v988_v10, 15  ;;  %vm1022_vm12 = vmand %vm303_vm9, %vm286_vm4  ;;  %vm384_vm13 = vcmp.eq.s32.totalorder %v382_v26, 0 }
   0xd   :  { %vm385_vm14 = vcmp.eq.s32.totalorder %v383_v31, 0  ;;  %v391_v35 = vrot.slane %v383_v31, 1  ;;  %vm297_vm15 = vcmp.ge.s32.totalorder %v972_v3, 4  ;;  %vm377_vm6 = vcmp.lt.s32.totalorder %v988_v10, 14 }
   0xe   :  { %vm1600_vm2 = vcmp.lt.s32.totalorder %v972_v3, 6  ;;  %v311_v36 = vsel %vm1604_vm3, %v309_v32, %v310_v28  ;;  %v312_v37 = vsel %vm1604_vm3, %v310_v28, %v309_v32  ;;  %vm1035_vm9 = vmand %vm385_vm14, %vm1598_vm11  ;;  %vm1602_vm1 = vcmp.lt.s32.totalorder %v972_v3, 4 }
   0xf   :  { %v308_v39 = vsel %vm304_vm10, 1, %v925_v4  ;;  %v313_v40 = vsel %vm286_vm4, %v312_v37, 0  ;;  %v316_v41 = vor.u32 %v311_v36, %v302_v21  ;;  %v392_v42 = vsel %vm1601_vm5, %v390_v33, %v391_v35 }
  0x10   :  { %v315_v43 = vor.u32 %v313_v40, %v301_v27  ;;  %v388_v44 = vsel %vm384_vm13, 1, %v925_v4  ;;  %v393_v45 = vsel %vm1601_vm5, %v391_v35, %v390_v33  ;;  %v396_v46 = vor.u32 %v392_v42, %v382_v26 }
  0x11   :  { %v307_v47 = vsel %vm1022_vm12, 1, %v925_v4  ;;  %vm318_vm14 = vcmp.eq.s32.totalorder %v316_v41, 0  ;;  %v328_v48 = vrot.slane %v316_v41, 6  ;;  %v395_v49 = vsel %vm1598_vm11, %v393_v45, 0 }
  0x12   :  { %vm317_vm4 = vcmp.eq.s32.totalorder %v315_v43, 0  ;;  %v322_v50 = vsel %vm318_vm14, 1, %v925_v4  ;;  %v327_v51 = vrot.slane %v315_v43, 6  ;;  %v397_v52 = vor.u32 %v395_v49, %v383_v31 }
  0x13   :  { %vm319_vm10 = vmand %vm317_vm4, %vm295_vm7  ;;  %v324_v53 = vshll.u32 %v322_v50, 1  ;;  %v389_v54 = vsel %vm1035_vm9, 1, %v925_v4  ;;  %vm398_vm13 = vcmp.eq.s32.totalorder %v396_v46, 0  ;;  %v408_v55 = vrot.slane %v396_v46, 2 }
  0x14   :  { %v321_v56 = vsel %vm319_vm10, 1, %v925_v4  ;;  %v330_v57 = vsel %vm1603_vm8, %v327_v51, %v328_v48  ;;  %v331_v58 = vsel %vm1603_vm8, %v328_v48, %v327_v51  ;;  %vm399_vm12 = vcmp.eq.s32.totalorder %v397_v52, 0 }
  0x15   :  { %v323_v59 = vshll.u32 %v321_v56, 1  ;;  %v326_v60 = vor.u32 %v324_v53, %v308_v39  ;;  %v332_v61 = vsel %vm295_vm7, %v331_v58, 0  ;;  %v335_v62 = vor.u32 %v330_v57, %v316_v41  ;;  %vm401_vm9 = vmand %vm399_vm12, %vm377_vm6 }
  0x16   :  { %v334_v63 = vor.u32 %v332_v61, %v315_v43  ;;  %v402_v0 = vsel %vm398_vm13, 1, %v925_v4  ;;  %v403_v5 = vsel %vm401_vm9, 1, %v925_v4  ;;  %v409_v7 = vrot.slane %v397_v52, 2 }
  0x17   :  { %v325_v8 = vor.u32 %v323_v59, %v307_v47  ;;  %vm337_vm14 = vcmp.eq.s32.totalorder %v335_v62, 0  ;;  %v347_v9 = vrot.slane %v335_v62, 4  ;;  %v404_v11 = vshll.u32 %v402_v0, 1 }
  0x18   :  { %vm336_vm4 = vcmp.eq.s32.totalorder %v334_v63, 0  ;;  %v341_v12 = vsel %vm337_vm14, 1, %v925_v4  ;;  %v346_v13 = vrot.slane %v334_v63, 4  ;;  %v405_v14 = vshll.u32 %v403_v5, 1 }
  0x19   :  { %vm338_vm7 = vmand %vm336_vm4, %vm297_vm15  ;;  %v343_v15 = vshll.u32 %v341_v12, 2  ;;  %v406_v16 = vor.u32 %v404_v11, %v388_v44  ;;  %v411_v17 = vsel %vm1600_vm2, %v408_v55, %v409_v7  ;;  %v412_v18 = vsel %vm1600_vm2, %v409_v7, %v408_v55 }
  0x1a   :  { %v340_v20 = vsel %vm338_vm7, 1, %v925_v4  ;;  %v349_v21 = vsel %vm1602_vm1, %v346_v13, %v347_v9  ;;  %v407_v22 = vor.u32 %v405_v14, %v389_v54  ;;  %v414_v23 = vsel %vm377_vm6, %v412_v18, 0 }
  0x1b   :  { %v342_v24 = vshll.u32 %v340_v20, 2  ;;  %v345_v25 = vor.u32 %v343_v15, %v326_v60  ;;  %v354_v26 = vor.u32 %v349_v21, %v335_v62  ;;  %v415_v27 = vor.u32 %v411_v17, %v396_v46 }
  0x1c   :  { %vm379_vm15 = vcmp.lt.s32.totalorder %v988_v10, 12  ;;  %v416_v28 = vor.u32 %v414_v23, %v397_v52  ;;  %vm156_vm14 = vcmp.le.s32.totalorder %v978_v6, 126  ;;  %vm27_vm4 = vcmp.ge.s32.totalorder %v978_v6, 1 }
  0x1d   :  { %v1083_v29 = vor.u32 %v342_v24, %v325_v8  ;;  %vm356_vm10 = vcmp.eq.s32.totalorder %v354_v26, 0  ;;  %vm417_vm13 = vcmp.eq.s32.totalorder %v415_v27, 0  ;;  %v427_v31 = vrot.slane %v415_v27, 4 }
  0x1e   :  { %v360_v32 = vsel %vm356_vm10, 1, %v925_v4  ;;  %vm418_vm12 = vcmp.eq.s32.totalorder %v416_v28, 0  ;;  %v421_v33 = vsel %vm417_vm13, 1, %v925_v4  ;;  %v428_v34 = vrot.slane %v416_v28, 4 }
  0x1f   :  { %v362_v35 = vshll.u32 %v360_v32, 3  ;;  %vm420_vm6 = vmand %vm418_vm12, %vm379_vm15  ;;  %v423_v36 = vshll.u32 %v421_v33, 2  ;;  %vm1608_vm7 = vcmp.lt.s32.totalorder %v978_v6, 127  ;;  %vm1609_vm15 = vcmp.ge.s32.totalorder %v978_v6, 2 }
  0x20   :  { %v422_v37 = vsel %vm420_vm6, 1, %v925_v4  ;;  %v429_v38 = vsel %vm1602_vm1, %v427_v31, %v428_v34  ;;  %vm164_vm10 = vcmp.lt.s32.totalorder %v978_v6, 126  ;;  %vm1614_vm13 = vcmp.ge.s32.totalorder %v978_v6, 4 }
  0x21   :  { %v1090_v39 = vor.u32 %v362_v35, %v345_v25  ;;  %v424_v40 = vshll.u32 %v422_v37, 2  ;;  %v425_v41 = vor.u32 %v423_v36, %v406_v16  ;;  %v433_v42 = vor.u32 %v429_v38, %v415_v27 }
  0x22   :  { %vm1607_vm12 = vcmp.lt.s32.totalorder %v978_v6, 124  ;;  %vm1613_vm6 = vcmp.ge.s32.totalorder %v978_v6, 8  ;;  %vm1605_vm11 = vcmp.lt.s32.totalorder %v978_v6, 112 }
  0x23   :  { %v1092_v43 = vor.u32 %v424_v40, %v407_v22  ;;  %vm435_vm9 = vcmp.eq.s32.totalorder %v433_v42, 0 }
  0x24   :  { %v439_v44 = vsel %vm435_vm9, 1, %v925_v4  ;;  %vm1606_vm9 = vcmp.lt.s32.totalorder %v978_v6, 120 }
  0x25   :  { %v441_v45 = vshll.u32 %v439_v44, 3 }
  0x27   :  { %v1095_v46 = vor.u32 %v441_v45, %v425_v41 }
  0x76   :  { %v158_v47 = vpop.permute.xlu1 %157  ;;  %v29_v48 = vpop.permute.xlu0 %28 }
  0x77   :  { %v161_v49 = vsel %vm156_vm14, %v158_v47, 0  ;;  %v32_v50 = vsel %vm27_vm4, %v29_v48, 0 }
  0x78   :  { %v1101_v51 = vsub.s32 1, %v161_v49  ;;  %v1103_v52 = vsub.s32 1, %v32_v50 }
  0x7a   :  { %178 = vrot.lane.b32.xlu0 %v1101_v51, %s926_s10  ;;  %48 = vrot.lane.b32.xlu2 %v1103_v52, %s927_s0  ;;  %vm42_vm8 = vcmp.eq.s32.totalorder %v1103_v52, 0 }
  0x7e   :  { %v160_v53 = vpop.permute.xlu1 %159  ;;  %v31_v54 = vpop.permute.xlu0 %30 }
  0x7f   :  { %v162_v55 = vsel %vm156_vm14, %v160_v53, 0  ;;  %v33_v56 = vsel %vm27_vm4, %v31_v54, 0  ;;  %vm1612_vm14 = vcmp.ge.s32.totalorder %v978_v6, 16 }
  0x80   :  { %v1111_v57 = vsub.s32 1, %v162_v55  ;;  %v1113_v58 = vsub.s32 1, %v33_v56 }
  0x82   :  { %180 = vrot.lane.b32.xlu1 %v1111_v57, %s926_s10  ;;  %50 = vrot.lane.b32.xlu2 %v1113_v58, %s927_s0 }
  0xd4   :  { %v49_v59 = vpop.permute.xlu2 %48 }
  0xd5   :  { %v52_v60 = vsel %vm27_vm4, %v49_v59, 0 }
  0xd6   :  { %v1122_v61 = vor.u32 %v52_v60, %v1103_v52 }
  0xd8   :  { %66 = vrot.lane.b32.xlu2 %v1122_v61, %s928_s11  ;;  %vm56_vm0 = vcmp.eq.s32.totalorder %v1122_v61, 0 }
  0xd9   :  { %vm58_vm5 = vmand %vm56_vm0, %vm1609_vm15  ;;  %vm1611_vm0 = vcmp.ge.s32.totalorder %v978_v6, 32 }
  0xdc   :  { %v51_v62 = vpop.permute.xlu2 %50 }
  0xdd   :  { %v53_v63 = vsel %vm27_vm4, %v51_v62, 0 }
  0xde   :  { %v1128_v0 = vor.u32 %v53_v63, %v1113_v58 }
  0xe0   :  { %68 = vrot.lane.b32.xlu0 %v1128_v0, %s928_s11 }
  0xec   :  { %v179_v5 = vpop.permute.xlu0 %178 }
  0xed   :  { %v182_v7 = vsel %vm1608_vm7, %v179_v5, 0 }
  0xee   :  { %v1135_v8 = vor.u32 %v182_v7, %v1101_v51 }
  0xf0   :  { %196 = vrot.lane.b32.xlu1 %v1135_v8, %s929_s12 }
  0xf4   :  { %v181_v9 = vpop.permute.xlu1 %180 }
  0xf5   :  { %v183_v11 = vsel %vm1608_vm7, %v181_v9, 0 }
  0xf6   :  { %v1141_v12 = vor.u32 %v183_v11, %v1111_v57 }
  0xf8   :  { %198 = vrot.lane.b32.xlu2 %v1141_v12, %s929_s12 }
 0x132   :  { %v67_v13 = vpop.permute.xlu2 %66 }
 0x133   :  { %v70_v14 = vsel %vm1609_vm15, %v67_v13, 0 }
 0x134   :  { %v1148_v15 = vor.u32 %v70_v14, %v1122_v61 }
 0x136   :  { %84 = vrot.lane.b32.xlu0 %v1148_v15, %s930_s13  ;;  %vm74_vm2 = vcmp.eq.s32.totalorder %v1148_v15, 0 }
 0x137   :  { %vm76_vm3 = vmand %vm74_vm2, %vm1614_vm13 }
 0x138   :  { %v78_v61 = vsel %vm76_vm3, 1, %v925_v4 }
 0x152   :  { %v199_v16 = vpop.permute.xlu2 %198  ;;  %v69_v17 = vpop.permute.xlu0 %68 }
 0x153   :  { %v201_v18 = vsel %vm164_vm10, %v199_v16, 0  ;;  %v71_v20 = vsel %vm1609_vm15, %v69_v17, 0 }
 0x154   :  { %v1157_v21 = vor.u32 %v201_v18, %v1141_v12  ;;  %v1160_v22 = vor.u32 %v71_v20, %v1128_v0  ;;  %v60_v18 = vsel %vm58_vm5, 1, %v925_v4  ;;  %v80_v20 = vshll.u32 %v78_v61, 2 }
 0x156   :  { %216 = vrot.lane.b32.xlu0 %v1157_v21, %s931_s14  ;;  %86 = vrot.lane.b32.xlu1 %v1160_v22, %s930_s13 }
 0x162   :  { %v197_v23 = vpop.permute.xlu1 %196 }
 0x163   :  { %v200_v24 = vsel %vm164_vm10, %v197_v23, 0 }
 0x164   :  { %v1167_v25 = vor.u32 %v200_v24, %v1135_v8 }
 0x166   :  { %214 = vrot.lane.b32.xlu2 %v1167_v25, %s931_s14 }
 0x1a8   :  { %v85_v26 = vpop.permute.xlu0 %84 }
 0x1a9   :  { %v88_v27 = vsel %vm1614_vm13, %v85_v26, 0 }
 0x1aa   :  { %v1174_v28 = vor.u32 %v88_v27, %v1148_v15  ;;  %v62_v15 = vshll.u32 %v60_v18, 1 }
 0x1ac   :  { %102 = vrot.lane.b32.xlu1 %v1174_v28, %s932_s15  ;;  %vm92_vm1 = vcmp.eq.s32.totalorder %v1174_v28, 0 }
 0x1c0   :  { %v215_v31 = vpop.permute.xlu2 %214 }
 0x1c1   :  { %v218_v32 = vsel %vm1607_vm12, %v215_v31, 0 }
 0x1c2   :  { %v1181_v33 = vor.u32 %v218_v32, %v1167_v25 }
 0x1c4   :  { %232 = vrot.lane.b32.xlu0 %v1181_v33, %s933_s16 }
 0x1c8   :  { %v87_v34 = vpop.permute.xlu1 %86  ;;  %v217_v35 = vpop.permute.xlu0 %216 }
 0x1c9   :  { %v89_v36 = vsel %vm1614_vm13, %v87_v34, 0  ;;  %v219_v37 = vsel %vm1607_vm12, %v217_v35, 0  ;;  %vm44_vm12 = vmand %vm42_vm8, %vm27_vm4  ;;  %vm186_vm8 = vcmp.eq.s32.totalorder %v1135_v8, 0 }
 0x1ca   :  { %v1189_v38 = vor.u32 %v89_v36, %v1160_v22  ;;  %v1192_v40 = vor.u32 %v219_v37, %v1157_v21  ;;  %v46_v23 = vsel %vm44_vm12, 1, %v925_v4  ;;  %vm57_vm12 = vcmp.eq.s32.totalorder %v1128_v0, 0 }
 0x1cb   :  { %v64_v26 = vor.u32 %v62_v15, %v46_v23  ;;  %v1626_v0 = vmov 0 }
 0x1cc   :  { %104 = vrot.lane.b32.xlu2 %v1189_v38, %s932_s15  ;;  %234 = vrot.lane.b32.xlu1 %v1192_v40, %s933_s16 }
 0x1cd   :  { %v82_v32 = vor.u32 %v80_v20, %v64_v26 }
 0x21e   :  { %v103_v41 = vpop.permute.xlu1 %102 }
 0x21f   :  { %v106_v42 = vsel %vm1613_vm6, %v103_v41, 0 }
 0x220   :  { %v108_v44 = vor.u32 %v106_v42, %v1174_v28 }
 0x222   :  { %120 = vrot.lane.b32.xlu2 %v108_v44, %s934_s17 }
 0x226   :  { %v105_v45 = vpop.permute.xlu2 %104 }
 0x227   :  { %v107_v47 = vsel %vm1613_vm6, %v105_v45, 0 }
 0x228   :  { %v1203_v48 = vor.u32 %v107_v47, %v1189_v38 }
 0x22a   :  { %122 = vrot.lane.b32.xlu0 %v1203_v48, %s934_s17 }
 0x236   :  { %v233_v49 = vpop.permute.xlu0 %232 }
 0x237   :  { %v236_v50 = vsel %vm1606_vm9, %v233_v49, 0 }
 0x238   :  { %v1210_v53 = vor.u32 %v236_v50, %v1181_v33 }
 0x23a   :  { %250 = vrot.lane.b32.xlu1 %v1210_v53, %s935_s18 }
 0x23e   :  { %v235_v54 = vpop.permute.xlu1 %234 }
 0x23f   :  { %v237_v55 = vsel %vm1606_vm9, %v235_v54, 0  ;;  %vm94_vm9 = vmand %vm92_vm1, %vm1613_vm6  ;;  %vm1610_vm1 = vcmp.ge.s32.totalorder %v978_v6, 64  ;;  %vm1623_vm6 = vcmp.ge.s32.totalorder %v978_v6, 2 }
 0x240   :  { %v1216_v56 = vor.u32 %v237_v55, %v1192_v40  ;;  %v96_v52 = vsel %vm94_vm9, 1, %v925_v4  ;;  %vm188_vm9 = vmand %vm186_vm8, %vm164_vm10  ;;  %vm240_vm8 = vcmp.eq.s32.totalorder %v1210_v53, 0 }
 0x241   :  { %v98_v27 = vshll.u32 %v96_v52, 3  ;;  %vm1292_vm13 = vmand %vm57_vm12, %vm1623_vm6 }
 0x242   :  { %252 = vrot.lane.b32.xlu2 %v1216_v56, %s935_s18  ;;  %v61_v54 = vsel %vm1292_vm13, 1, %v925_v4  ;;  %vm1641_vm13 = vcmp.ge.s32.totalorder %v978_v6, 8 }
 0x243   :  { %v100_v37 = vor.u32 %v98_v27, %v82_v32  ;;  %v63_v18 = vshll.u32 %v61_v54, 1 }
 0x27c   :  { %v121_v59 = vpop.permute.xlu2 %120 }
 0x27d   :  { %v124_v60 = vsel %vm1612_vm14, %v121_v59, 0 }
 0x27e   :  { %v126_v62 = vor.u32 %v124_v60, %v108_v44 }
 0x280   :  { %138 = vrot.lane.b32.xlu0 %v126_v62, %s936_s19  ;;  %vm128_vm7 = vcmp.eq.s32.totalorder %v126_v62, 0 }
 0x281   :  { %vm130_vm2 = vmand %vm128_vm7, %vm1611_vm0  ;;  %vm172_vm7 = vcmp.eq.s32.totalorder %v1101_v51, 0 }
 0x282   :  { %v132_v28 = vsel %vm130_vm2, 1, %v925_v4  ;;  %vm43_vm2 = vcmp.eq.s32.totalorder %v1113_v58, 0  ;;  %v190_v58 = vsel %vm188_vm9, 1, %v925_v4  ;;  %vm1631_vm9 = vcmp.lt.s32.totalorder %v978_v6, 112 }
 0x283   :  { %v134_v41 = vshll.u32 %v132_v28, 5 }
 0x29c   :  { %v253_v63 = vpop.permute.xlu2 %252  ;;  %v123_v5 = vpop.permute.xlu0 %122 }
 0x29d   :  { %v255_v7 = vsel %vm1605_vm11, %v253_v63, 0  ;;  %v125_v9 = vsel %vm1612_vm14, %v123_v5, 0 }
 0x29e   :  { %v1228_v11 = vor.u32 %v255_v7, %v1216_v56  ;;  %v1231_v13 = vor.u32 %v125_v9, %v1203_v48 }
 0x2a0   :  { %270 = vrot.lane.b32.xlu0 %v1228_v11, %s937_s20  ;;  %140 = vrot.lane.b32.xlu1 %v1231_v13, %s936_s19 }
 0x2ac   :  { %v251_v14 = vpop.permute.xlu1 %250 }
 0x2ad   :  { %v254_v16 = vsel %vm1605_vm11, %v251_v14, 0  ;;  %vm110_vm11 = vcmp.eq.s32.totalorder %v108_v44, 0 }
 0x2ae   :  { %v1238_v17 = vor.u32 %v254_v16, %v1210_v53  ;;  %vm112_vm15 = vmand %vm110_vm11, %vm1612_vm14  ;;  %vm187_vm11 = vcmp.eq.s32.totalorder %v1141_v12, 0 }
 0x2af   :  { %v114_v24 = vsel %vm112_vm15, 1, %v925_v4  ;;  %vm204_vm15 = vcmp.eq.s32.totalorder %v1167_v25, 0  ;;  %vm1309_vm6 = vmand %vm187_vm11, %vm164_vm10  ;;  %v192_v25 = vshll.u32 %v190_v58, 1  ;;  %vm168_vm10 = vcmp.lt.s32.totalorder %v978_v6, 96 }
 0x2b0   :  { %268 = vrot.lane.b32.xlu2 %v1238_v17, %s937_s20  ;;  %v116_v34 = vshll.u32 %v114_v24, 4  ;;  %vm258_vm12 = vcmp.eq.s32.totalorder %v1238_v17, 0  ;;  %v191_v55 = vsel %vm1309_vm6, 1, %v925_v4  ;;  %vm241_vm6 = vcmp.eq.s32.totalorder %v1216_v56, 0 }
 0x2b1   :  { %vm260_vm11 = vmand %vm258_vm12, %vm168_vm10  ;;  %v193_v61 = vshll.u32 %v191_v55, 1 }
 0x2b2   :  { %v118_v42 = vor.u32 %v116_v34, %v100_v37  ;;  %v262_v7 = vsel %vm260_vm11, 1, %v925_v4  ;;  %vm169_vm11 = vcmp.lt.s32.totalorder %v978_v6, 64 }
 0x2b3   :  { %v264_v24 = vshll.u32 %v262_v7, 5 }
 0x2b4   :  { %v136_v45 = vor.u32 %v134_v41, %v118_v42 }
 0x2f2   :  { %v139_v31 = vpop.permute.xlu0 %138 }
 0x2f3   :  { %v142_v35 = vsel %vm1611_vm0, %v139_v31, 0  ;;  %vm1622_vm0 = vcmp.lt.s32.totalorder %v978_v6, 124 }
 0x2f4   :  { %v144_v36 = vor.u32 %v142_v35, %v126_v62  ;;  %vm206_vm14 = vmand %vm204_vm15, %vm1622_vm0  ;;  %vm1628_vm0 = vcmp.lt.s32.totalorder %v978_v6, 120 }
 0x2f5   :  { %v208_v12 = vsel %vm206_vm14, 1, %v925_v4  ;;  %vm93_vm14 = vcmp.eq.s32.totalorder %v1189_v38, 0 }
 0x2f6   :  { %vm146_vm3 = vcmp.eq.s32.totalorder %v144_v36, 0  ;;  %v210_v53 = vshll.u32 %v208_v12, 2 }
 0x2f7   :  { %vm148_vm5 = vmand %vm146_vm3, %vm1610_vm1  ;;  %vm1619_vm3 = vcmp.lt.s32.totalorder %v978_v6, 127  ;;  %vm222_vm1 = vcmp.eq.s32.totalorder %v1181_v33, 0 }
 0x2f8   :  { %v150_v44 = vsel %vm148_vm5, 1, %v925_v4  ;;  %vm1282_vm5 = vmand %vm172_vm7, %vm1619_vm3  ;;  %vm75_vm3 = vcmp.eq.s32.totalorder %v1160_v22, 0 }
 0x2f9   :  { %v152_v47 = vshll.u32 %v150_v44, 6  ;;  %vm1300_vm7 = vmand %vm43_vm2, %vm27_vm4  ;;  %vm173_vm4 = vcmp.eq.s32.totalorder %v1111_v57, 0 }
 0x2fa   :  { %v1627_v0 = vsel %vm1300_vm7, 4294967295, %v1626_v0  ;;  %vm224_vm15 = vmand %vm222_vm1, %vm1628_vm0  ;;  %vm205_vm7 = vcmp.eq.s32.totalorder %v1157_v21, 0  ;;  %vm1632_vm1 = vcmp.ge.s32.totalorder %v978_v6, 4  ;;  %v176_v21 = vsel %vm1282_vm5, 1, %v925_v4 }
 0x2fb   :  { %v1270_v49 = vor.u32 %v152_v47, %v136_v45  ;;  %vm242_vm2 = vmand %vm240_vm8, %vm1631_vm9  ;;  %v226_v33 = vsel %vm224_vm15, 1, %v925_v4  ;;  %vm1635_vm8 = vcmp.lt.s32.totalorder %v978_v6, 127  ;;  %v194_v59 = vor.u32 %v192_v25, %v176_v21 }
 0x2fc   :  { %vm1321_vm0 = vmand %vm75_vm3, %vm1632_vm1  ;;  %vm223_vm3 = vcmp.eq.s32.totalorder %v1192_v40, 0  ;;  %v244_v38 = vsel %vm242_vm2, 1, %v925_v4  ;;  %vm1638_vm15 = vcmp.lt.s32.totalorder %v978_v6, 124  ;;  %vm111_vm5 = vcmp.eq.s32.totalorder %v1203_v48, 0 }
 0x2fd   :  { %vm1332_vm9 = vmand %vm173_vm4, %vm1635_vm8  ;;  %v228_v62 = vshll.u32 %v226_v33, 3  ;;  %v79_v40 = vsel %vm1321_vm0, 1, %v925_v4  ;;  %v212_v9 = vor.u32 %v210_v53, %v194_v59  ;;  %v246_v14 = vshll.u32 %v244_v38, 4 }
 0x2fe   :  { %vm1349_vm12 = vmand %vm205_vm7, %vm1638_vm15  ;;  %vm1644_vm7 = vcmp.lt.s32.totalorder %v978_v6, 120  ;;  %vm129_vm1 = vcmp.eq.s32.totalorder %v1231_v13, 0  ;;  %vm1647_vm0 = vcmp.ge.s32.totalorder %v978_v6, 16  ;;  %vm1648_vm8 = vcmp.lt.s32.totalorder %v978_v6, 112 }
 0x2ff   :  { %vm1359_vm4 = vmand %vm93_vm14, %vm1641_vm13  ;;  %v209_v52 = vsel %vm1349_vm12, 1, %v925_v4  ;;  %v230_v20 = vor.u32 %v228_v62, %v212_v9  ;;  %vm259_vm15 = vcmp.eq.s32.totalorder %v1228_v11, 0  ;;  %v81_v26 = vshll.u32 %v79_v40, 2 }
 0x300   :  { %vm1367_vm2 = vmand %vm223_vm3, %vm1644_vm7  ;;  %v97_v27 = vsel %vm1359_vm4, 1, %v925_v4  ;;  %vm1652_vm12 = vcmp.ge.s32.totalorder %v978_v6, 32  ;;  %v177_v28 = vsel %vm1332_vm9, 1, %v925_v4  ;;  %v211_v37 = vshll.u32 %v209_v52, 2 }
 0x301   :  { %vm113_vm14 = vmand %vm111_vm5, %vm1647_vm0  ;;  %vm1651_vm5 = vnez %v1627_v0  ;;  %v227_v31 = vsel %vm1367_vm2, 1, %v925_v4  ;;  %v248_v34 = vor.u32 %v246_v14, %v230_v20  ;;  %v195_v36 = vor.u32 %v193_v61, %v177_v28 }
 0x302   :  { %vm1385_vm3 = vmand %vm241_vm6, %vm1648_vm8  ;;  %v115_v32 = vsel %vm113_vm14, 1, %v925_v4  ;;  %v99_v42 = vshll.u32 %v97_v27, 3  ;;  %v229_v51 = vshll.u32 %v227_v31, 3  ;;  %vm1656_vm0 = vcmp.ge.s32.totalorder %v978_v6, 64 }
 0x303   :  { %vm1400_vm13 = vmand %vm129_vm1, %vm1652_vm12  ;;  %v245_v44 = vsel %vm1385_vm3, 1, %v925_v4  ;;  %v266_v45 = vor.u32 %v264_v24, %v248_v34  ;;  %v117_v58 = vshll.u32 %v115_v32, 4  ;;  %v213_v57 = vor.u32 %v211_v37, %v195_v36 }
 0x304   :  { %vm261_vm7 = vmand %vm259_vm15, %vm168_vm10  ;;  %v133_v0 = vsel %vm1400_vm13, 1, %v925_v4  ;;  %v247_v21 = vshll.u32 %v245_v44, 4 }
 0x305   :  { %v263_v25 = vsel %vm261_vm7, 1, %v925_v4  ;;  %vm1655_vm9 = vmmov %vm1652_vm12  ;;  %v135_v59 = vshll.u32 %v133_v0, 5  ;;  %v231_v60 = vor.u32 %v229_v51, %v213_v57 }
 0x306   :  { %v265_v62 = vshll.u32 %v263_v25, 5 }
 0x30a   :  { %v269_v5 = vpop.permute.xlu2 %268 }
 0x30b   :  { %v272_v16 = vsel %vm168_vm10, %v269_v5, 0  ;;  %v249_v5 = vor.u32 %v247_v21, %v231_v60 }
 0x30c   :  { %v274_v15 = vor.u32 %v272_v16, %v1238_v17  ;;  %v47_v17 = vsel %vm1651_vm5, 1, %v925_v4 }
 0x30d   :  { %v65_v35 = vor.u32 %v63_v18, %v47_v17  ;;  %v267_v9 = vor.u32 %v265_v62, %v249_v5 }
 0x30e   :  { %vm276_vm6 = vcmp.eq.s32.totalorder %v274_v15, 0 }
 0x30f   :  { %vm278_vm4 = vmand %vm276_vm6, %vm169_vm11  ;;  %v83_v50 = vor.u32 %v81_v26, %v65_v35 }
 0x310   :  { %v280_v41 = vsel %vm278_vm4, 1, %v925_v4 }
 0x311   :  { %v282_v47 = vshll.u32 %v280_v41, 6  ;;  %v101_v55 = vor.u32 %v99_v42, %v83_v50 }
 0x312   :  { %v141_v8 = vpop.permute.xlu1 %140  ;;  %v271_v12 = vpop.permute.xlu0 %270 }
 0x313   :  { %v1425_v22 = vor.u32 %v282_v47, %v266_v45  ;;  %v143_v33 = vsel %vm1655_vm9, %v141_v8, 0  ;;  %v273_v53 = vsel %vm168_vm10, %v271_v12, 0  ;;  %v119_v40 = vor.u32 %v117_v58, %v101_v55 }
 0x314   :  { %v145_v54 = vor.u32 %v143_v33, %v1231_v13  ;;  %v275_v38 = vor.u32 %v273_v53, %v1228_v11 }
 0x315   :  { %v137_v7 = vor.u32 %v135_v59, %v119_v40 }
 0x316   :  { %vm147_vm2 = vcmp.eq.s32.totalorder %v145_v54, 0  ;;  %vm277_vm1 = vcmp.eq.s32.totalorder %v275_v38, 0 }
 0x317   :  { %vm149_vm14 = vmand %vm147_vm2, %vm1656_vm0 }
 0x318   :  { %v151_v63 = vsel %vm149_vm14, 1, %v925_v4  ;;  %vm279_vm10 = vmand %vm277_vm1, %vm169_vm11 }
 0x319   :  { %v153_v13 = vshll.u32 %v151_v63, 6  ;;  %v281_v11 = vsel %vm279_vm10, 1, %v925_v4 }
 0x31a   :  { %v283_v48 = vshll.u32 %v281_v11, 6 }
 0x31b   :  { %v1439_v14 = vor.u32 %v153_v13, %v137_v7 }
 0x31c   :  { %v1441_v16 = vor.u32 %v283_v48, %v267_v9 }
 0x31d LB: > { %s938_s22 = smov 1   ;;  %v458_v4 = vand.u32 1, %v1270_v49  ;;  %s939_s23 = smov 2   ;;  %v459_v52 = vand.u32 1, %v1439_v14  ;;  %v472_v17 = vand.u32 2, %v1270_v49  ;;  %v473_v28 = vand.u32 2, %v1439_v14  ;;  %s923_s21 = sphi %s1449_s21, %s798_s21   ;;  %v919_v19 = vphi %v1001_v19, %v1684_v19   ;;  %v915_v30 = vphi %v1015_v30, %v1683_v30  }
 0x31e   : > { %462 = vrot.lane.b32.xlu0 %v919_v19, %s938_s22  ;;  %s940_s24 = smov 4   ;;  %v486_v35 = vand.u32 4, %v1270_v49  ;;  %s941_s25 = smov 8   ;;  %v487_v42 = vand.u32 4, %v1439_v14  ;;  %v500_v50 = vand.u32 8, %v1270_v49  ;;  %v501_v8 = vand.u32 8, %v1439_v14 }
 0x31f   : > { %vm460_vm11 = vcmp.ne.s32.totalorder %v458_v4, 0  ;;  %vm461_vm3 = vcmp.ne.s32.totalorder %v459_v52, 0  ;;  %vm474_vm5 = vcmp.ne.s32.totalorder %v472_v17, 0  ;;  %vm475_vm13 = vcmp.ne.s32.totalorder %v473_v28, 0  ;;  %s942_s26 = smov 16   ;;  %s943_s27 = smov 32  }
 0x320   : > { %vm488_vm4 = vcmp.ne.s32.totalorder %v486_v35, 0  ;;  %vm489_vm9 = vcmp.ne.s32.totalorder %v487_v42, 0  ;;  %vm502_vm1 = vcmp.ne.s32.totalorder %v500_v50, 0  ;;  %vm503_vm14 = vcmp.ne.s32.totalorder %v501_v8, 0  ;;  %s944_s28 = smov 64   ;;  %s945_s29 = smov 127  }
 0x321   : > { %v514_v53 = vand.u32 16, %v1270_v49  ;;  %v515_v38 = vand.u32 16, %v1439_v14  ;;  %v528_v62 = vand.u32 32, %v1270_v49  ;;  %v529_v7 = vand.u32 32, %v1439_v14  ;;  %s946_s30 = smov 126   ;;  %s947_s2 = smov 124  }
 0x322   : > { %v542_v48 = vand.u32 64, %v1270_v49  ;;  %s948_s3 = smov 120   ;;  %s949_s4 = smov 112  }
 0x323   : > { %s950_s5 = smov 96   ;;  %s798_s21 = sadd.s32 1, %s923_s21  }
 0x324   : > { %p453_p1 = scmp.lt.s32.totalorder %s798_s21, 2048 }
 0x326   : > { %464 = vrot.lane.b32.xlu0 %v915_v30, %s938_s22 }
 0x390   : > { %v463_v18 = vpop.permute.xlu0 %462 }
 0x391   : > { %vm466_vm8 = vcmp.lt.s32.totalorder %v919_v19, %v463_v18 }
 0x392   : > { %v467_v61 = vsel %vm466_vm8, %v919_v19, %v463_v18 }
 0x393   : > { %v470_v15 = vsel %vm460_vm11, %v467_v61, %v919_v19  ;;  %vm516_vm11 = vcmp.ne.s32.totalorder %v514_v53, 0 }
 0x394   : > { %476 = vrot.lane.b32.xlu1 %v470_v15, %s939_s23 }
 0x398   : > { %v465_v20 = vpop.permute.xlu0 %464 }
 0x399   : > { %vm468_vm15 = vcmp.lt.s32.totalorder %v915_v30, %v465_v20 }
 0x39a   : > { %v469_v23 = vsel %vm468_vm15, %v915_v30, %v465_v20 }
 0x39b   : > { %v471_v24 = vsel %vm461_vm3, %v469_v23, %v915_v30  ;;  %vm517_vm3 = vcmp.ne.s32.totalorder %v515_v38, 0 }
 0x39c   : > { %478 = vrot.lane.b32.xlu1 %v471_v24, %s939_s23 }
 0x406   : > { %v477_v26 = vpop.permute.xlu1 %476 }
 0x407   : > { %vm480_vm12 = vcmp.lt.s32.totalorder %v470_v15, %v477_v26 }
 0x408   : > { %v481_v27 = vsel %vm480_vm12, %v470_v15, %v477_v26 }
 0x409   : > { %v484_v56 = vsel %vm474_vm5, %v481_v27, %v470_v15  ;;  %vm530_vm5 = vcmp.ne.s32.totalorder %v528_v62, 0  ;;  %v543_v15 = vand.u32 64, %v1439_v14 }
 0x40a   : > { %490 = vrot.lane.b32.xlu2 %v484_v56, %s940_s24 }
 0x40e   : > { %v479_v31 = vpop.permute.xlu1 %478 }
 0x40f   : > { %vm482_vm6 = vcmp.lt.s32.totalorder %v471_v24, %v479_v31 }
 0x410   : > { %v483_v32 = vsel %vm482_vm6, %v471_v24, %v479_v31 }
 0x411   : > { %v485_v34 = vsel %vm475_vm13, %v483_v32, %v471_v24  ;;  %vm531_vm13 = vcmp.ne.s32.totalorder %v529_v7, 0  ;;  %v556_v24 = vand.u32 1, %v1425_v22 }
 0x412   : > { %492 = vrot.lane.b32.xlu2 %v485_v34, %s940_s24 }
 0x464   : > { %v491_v36 = vpop.permute.xlu2 %490 }
 0x465   : > { %vm494_vm7 = vcmp.lt.s32.totalorder %v484_v56, %v491_v36 }
 0x466   : > { %v495_v37 = vsel %vm494_vm7, %v484_v56, %v491_v36 }
 0x467   : > { %v498_v41 = vsel %vm488_vm4, %v495_v37, %v484_v56  ;;  %vm544_vm4 = vcmp.ne.s32.totalorder %v542_v48, 0  ;;  %v557_v56 = vand.u32 1, %v1441_v16 }
 0x468   : > { %504 = vrot.lane.b32.xlu0 %v498_v41, %s941_s25 }
 0x46c   : > { %v493_v44 = vpop.permute.xlu2 %492 }
 0x46d   : > { %vm496_vm2 = vcmp.lt.s32.totalorder %v485_v34, %v493_v44 }
 0x46e   : > { %v497_v45 = vsel %vm496_vm2, %v485_v34, %v493_v44 }
 0x46f   : > { %v499_v47 = vsel %vm489_vm9, %v497_v45, %v485_v34  ;;  %vm545_vm9 = vcmp.ne.s32.totalorder %v543_v15, 0  ;;  %v570_v34 = vand.u32 2, %v1425_v22 }
 0x470   : > { %506 = vrot.lane.b32.xlu1 %v499_v47, %s941_s25 }
 0x4da   : > { %v505_v51 = vpop.permute.xlu0 %504 }
 0x4db   : > { %vm508_vm0 = vcmp.lt.s32.totalorder %v498_v41, %v505_v51 }
 0x4dc   : > { %v509_v58 = vsel %vm508_vm0, %v498_v41, %v505_v51 }
 0x4dd   : > { %v512_v0 = vsel %vm502_vm1, %v509_v58, %v498_v41  ;;  %vm558_vm1 = vcmp.ne.s32.totalorder %v556_v24, 0  ;;  %v571_v41 = vand.u32 2, %v1441_v16  ;;  %v640_v24 = vand.u32 64, %v1425_v22 }
 0x4de   : > { %518 = vrot.lane.b32.xlu2 %v512_v0, %s942_s26 }
 0x4e2   : > { %v507_v12 = vpop.permute.xlu1 %506 }
 0x4e3   : > { %vm510_vm10 = vcmp.lt.s32.totalorder %v499_v47, %v507_v12 }
 0x4e4   : > { %v511_v25 = vsel %vm510_vm10, %v499_v47, %v507_v12 }
 0x4e5   : > { %v513_v33 = vsel %vm503_vm14, %v511_v25, %v499_v47  ;;  %vm559_vm14 = vcmp.ne.s32.totalorder %v557_v56, 0  ;;  %v584_v47 = vand.u32 4, %v1425_v22 }
 0x4e6   : > { %520 = vrot.lane.b32.xlu0 %v513_v33, %s942_s26 }
 0x538   : > { %v519_v57 = vpop.permute.xlu2 %518 }
 0x539   : > { %vm522_vm8 = vcmp.lt.s32.totalorder %v512_v0, %v519_v57 }
 0x53a   : > { %v523_v21 = vsel %vm522_vm8, %v512_v0, %v519_v57 }
 0x53b   : > { %v526_v54 = vsel %vm516_vm11, %v523_v21, %v512_v0  ;;  %vm572_vm11 = vcmp.ne.s32.totalorder %v570_v34, 0  ;;  %v585_v0 = vand.u32 4, %v1441_v16 }
 0x53c   : > { %532 = vrot.lane.b32.xlu1 %v526_v54, %s943_s27 }
 0x558   : > { %v521_v55 = vpop.permute.xlu0 %520 }
 0x559   : > { %vm524_vm15 = vcmp.lt.s32.totalorder %v513_v33, %v521_v55 }
 0x55a   : > { %v525_v59 = vsel %vm524_vm15, %v513_v33, %v521_v55 }
 0x55b   : > { %v527_v60 = vsel %vm517_vm3, %v525_v59, %v513_v33  ;;  %vm573_vm3 = vcmp.ne.s32.totalorder %v571_v41, 0  ;;  %v598_v33 = vand.u32 8, %v1425_v22 }
 0x55c   : > { %534 = vrot.lane.b32.xlu2 %v527_v60, %s943_s27 }
 0x5ae   : > { %v533_v40 = vpop.permute.xlu1 %532 }
 0x5af   : > { %vm536_vm12 = vcmp.lt.s32.totalorder %v526_v54, %v533_v40 }
 0x5b0   : > { %v537_v63 = vsel %vm536_vm12, %v526_v54, %v533_v40 }
 0x5b1   : > { %v540_v5 = vsel %vm530_vm5, %v537_v63, %v526_v54  ;;  %vm586_vm5 = vcmp.ne.s32.totalorder %v584_v47, 0  ;;  %v599_v54 = vand.u32 8, %v1441_v16 }
 0x5b2   : > { %546 = vrot.lane.b32.xlu0 %v540_v5, %s944_s28 }
 0x5b6   : > { %v535_v13 = vpop.permute.xlu2 %534 }
 0x5b7   : > { %vm538_vm6 = vcmp.lt.s32.totalorder %v527_v60, %v535_v13 }
 0x5b8   : > { %v539_v11 = vsel %vm538_vm6, %v527_v60, %v535_v13 }
 0x5b9   : > { %v541_v9 = vsel %vm531_vm13, %v539_v11, %v527_v60  ;;  %vm587_vm13 = vcmp.ne.s32.totalorder %v585_v0, 0  ;;  %v612_v60 = vand.u32 16, %v1425_v22 }
 0x5ba   : > { %548 = vrot.lane.b32.xlu1 %v541_v9, %s944_s28 }
 0x624   : > { %v547_v4 = vpop.permute.xlu0 %546 }
 0x625   : > { %vm550_vm7 = vcmp.lt.s32.totalorder %v540_v5, %v547_v4 }
 0x626   : > { %v551_v18 = vsel %vm550_vm7, %v540_v5, %v547_v4 }
 0x627   : > { %v554_v61 = vsel %vm544_vm4, %v551_v18, %v540_v5  ;;  %vm600_vm4 = vcmp.ne.s32.totalorder %v598_v33, 0  ;;  %v613_v5 = vand.u32 16, %v1441_v16  ;;  %v683_v33 = vand.u32 4, %v1090_v39 }
 0x628   : > { %560 = vrot.lane.b32.xlu2 %v554_v61, %s945_s29 }
 0x62c   : > { %v549_v52 = vpop.permute.xlu1 %548 }
 0x62d   : > { %vm552_vm2 = vcmp.lt.s32.totalorder %v541_v9, %v549_v52 }
 0x62e   : > { %v553_v20 = vsel %vm552_vm2, %v541_v9, %v549_v52 }
 0x62f   : > { %v555_v23 = vsel %vm545_vm9, %v553_v20, %v541_v9  ;;  %vm601_vm9 = vcmp.ne.s32.totalorder %v599_v54, 0  ;;  %v626_v9 = vand.u32 32, %v1425_v22 }
 0x630   : > { %562 = vrot.lane.b32.xlu0 %v555_v23, %s945_s29 }
 0x682   : > { %v561_v17 = vpop.permute.xlu2 %560 }
 0x683   : > { %vm564_vm0 = vcmp.lt.s32.totalorder %v554_v61, %v561_v17 }
 0x684   : > { %v565_v26 = vsel %vm564_vm0, %v554_v61, %v561_v17  ;;  %v641_v17 = vand.u32 64, %v1441_v16 }
 0x685   : > { %v568_v27 = vsel %vm558_vm1, %v565_v26, %v554_v61  ;;  %vm614_vm1 = vcmp.ne.s32.totalorder %v612_v60, 0  ;;  %v627_v61 = vand.u32 32, %v1441_v16  ;;  %v697_v60 = vand.u32 8, %v1090_v39 }
 0x686   : > { %574 = vrot.lane.b32.xlu1 %v568_v27, %s946_s30 }
 0x6a2   : > { %v563_v28 = vpop.permute.xlu0 %562 }
 0x6a3   : > { %vm566_vm10 = vcmp.lt.s32.totalorder %v555_v23, %v563_v28 }
 0x6a4   : > { %v567_v31 = vsel %vm566_vm10, %v555_v23, %v563_v28  ;;  %v654_v28 = vand.u32 1, %v1083_v29 }
 0x6a5   : > { %v569_v32 = vsel %vm559_vm14, %v567_v31, %v555_v23  ;;  %vm615_vm14 = vcmp.ne.s32.totalorder %v613_v5, 0  ;;  %v655_v31 = vand.u32 1, %v1090_v39 }
 0x6a6   : > { %576 = vrot.lane.b32.xlu2 %v569_v32, %s946_s30 }
 0x6f8   : > { %v575_v35 = vpop.permute.xlu1 %574 }
 0x6f9   : > { %vm578_vm8 = vcmp.lt.s32.totalorder %v568_v27, %v575_v35 }
 0x6fa   : > { %v579_v36 = vsel %vm578_vm8, %v568_v27, %v575_v35 }
 0x6fb   : > { %v582_v37 = vsel %vm572_vm11, %v579_v36, %v568_v27  ;;  %vm628_vm11 = vcmp.ne.s32.totalorder %v626_v9, 0  ;;  %v704_v9 = vand.u32 1, %v1095_v46 }
 0x6fc   : > { %588 = vrot.lane.b32.xlu0 %v582_v37, %s947_s2 }
 0x700   : > { %v577_v42 = vpop.permute.xlu2 %576 }
 0x701   : > { %vm580_vm15 = vcmp.lt.s32.totalorder %v569_v32, %v577_v42 }
 0x702   : > { %v581_v44 = vsel %vm580_vm15, %v569_v32, %v577_v42  ;;  %v668_v42 = vand.u32 2, %v1083_v29 }
 0x703   : > { %v583_v45 = vsel %vm573_vm3, %v581_v44, %v569_v32  ;;  %vm629_vm3 = vcmp.ne.s32.totalorder %v627_v61, 0  ;;  %v669_v44 = vand.u32 2, %v1090_v39 }
 0x704   : > { %590 = vrot.lane.b32.xlu1 %v583_v45, %s947_s2 }
 0x76e   : > { %v589_v50 = vpop.permute.xlu0 %588 }
 0x76f   : > { %vm592_vm12 = vcmp.lt.s32.totalorder %v582_v37, %v589_v50 }
 0x770   : > { %v593_v51 = vsel %vm592_vm12, %v582_v37, %v589_v50  ;;  %vm642_vm12 = vcmp.ne.s32.totalorder %v640_v24, 0 }
 0x771   : > { %v596_v58 = vsel %vm586_vm5, %v593_v51, %v582_v37 }
 0x772   : > { %602 = vrot.lane.b32.xlu2 %v596_v58, %s948_s3 }
 0x776   : > { %v591_v8 = vpop.permute.xlu1 %590 }
 0x777   : > { %vm594_vm6 = vcmp.lt.s32.totalorder %v583_v45, %v591_v8 }
 0x778   : > { %v595_v12 = vsel %vm594_vm6, %v583_v45, %v591_v8 }
 0x779   : > { %v597_v25 = vsel %vm587_vm13, %v595_v12, %v583_v45  ;;  %vm643_vm13 = vcmp.ne.s32.totalorder %v641_v17, 0  ;;  %v718_v17 = vand.u32 2, %v1095_v46 }
 0x77a   : > { %604 = vrot.lane.b32.xlu0 %v597_v25, %s948_s3 }
 0x7cc   : > { %v603_v53 = vpop.permute.xlu2 %602 }
 0x7cd   : > { %vm606_vm7 = vcmp.lt.s32.totalorder %v596_v58, %v603_v53 }
 0x7ce   : > { %v607_v57 = vsel %vm606_vm7, %v596_v58, %v603_v53  ;;  %vm657_vm7 = vcmp.ne.s32.totalorder %v655_v31, 0 }
 0x7cf   : > { %v610_v21 = vsel %vm600_vm4, %v607_v57, %v596_v58  ;;  %vm656_vm4 = vcmp.ne.s32.totalorder %v654_v28, 0 }
 0x7d0   : > { %616 = vrot.lane.b32.xlu1 %v610_v21, %s949_s4 }
 0x7ec   : > { %v605_v38 = vpop.permute.xlu0 %604 }
 0x7ed   : > { %vm608_vm2 = vcmp.lt.s32.totalorder %v597_v25, %v605_v38 }
 0x7ee   : > { %v609_v55 = vsel %vm608_vm2, %v597_v25, %v605_v38 }
 0x7ef   : > { %v611_v59 = vsel %vm601_vm9, %v609_v55, %v597_v25  ;;  %vm1657_vm9 = vcmp.lt.s32.totalorder %v972_v3, 1  ;;  %v682_v25 = vand.u32 4, %v1083_v29 }
 0x7f0   : > { %618 = vrot.lane.b32.xlu2 %v611_v59, %s949_s4  ;;  %vm1658_vm2 = vmmov %vm1657_vm9 }
 0x842   : > { %v617_v62 = vpop.permute.xlu1 %616 }
 0x843   : > { %vm620_vm0 = vcmp.lt.s32.totalorder %v610_v21, %v617_v62 }
 0x844   : > { %v621_v40 = vsel %vm620_vm0, %v610_v21, %v617_v62 }
 0x845   : > { %v624_v63 = vsel %vm614_vm1, %v621_v40, %v610_v21 }
 0x846   : > { %630 = vrot.lane.b32.xlu0 %v624_v63, %s950_s5 }
 0x84a   : > { %v619_v7 = vpop.permute.xlu2 %618 }
 0x84b   : > { %vm622_vm10 = vcmp.lt.s32.totalorder %v611_v59, %v619_v7 }
 0x84c   : > { %v623_v13 = vsel %vm622_vm10, %v611_v59, %v619_v7  ;;  %vm671_vm10 = vcmp.ne.s32.totalorder %v669_v44, 0 }
 0x84d   : > { %v625_v11 = vsel %vm615_vm14, %v623_v13, %v611_v59  ;;  %vm670_vm14 = vcmp.ne.s32.totalorder %v668_v42, 0  ;;  %v696_v59 = vand.u32 8, %v1083_v29 }
 0x84e   : > { %632 = vrot.lane.b32.xlu1 %v625_v11, %s950_s5 }
 0x8b8   : > { %v631_v48 = vpop.permute.xlu0 %630 }
 0x8b9   : > { %vm634_vm8 = vcmp.lt.s32.totalorder %v624_v63, %v631_v48 }
 0x8ba   : > { %v635_v4 = vsel %vm634_vm8, %v624_v63, %v631_v48  ;;  %v705_v48 = vand.u32 1, %v1092_v43 }
 0x8bb   : > { %v638_v18 = vsel %vm628_vm11, %v635_v4, %v624_v63  ;;  %vm1659_vm11 = vcmp.lt.s32.totalorder %v972_v3, 2 }
 0x8bc   : > { %644 = vrot.lane.b32.xlu2 %v638_v18, %s944_s28  ;;  %vm1660_vm8 = vmmov %vm1659_vm11 }
 0x8c0   : > { %v633_v15 = vpop.permute.xlu1 %632 }
 0x8c1   : > { %vm636_vm15 = vcmp.lt.s32.totalorder %v625_v11, %v633_v15 }
 0x8c2   : > { %v637_v52 = vsel %vm636_vm15, %v625_v11, %v633_v15 }
 0x8c3   : > { %v639_v20 = vsel %vm629_vm3, %v637_v52, %v625_v11 }
 0x8c4   : > { %646 = vrot.lane.b32.xlu0 %v639_v20, %s944_s28 }
 0x916   : > { %v645_v23 = vpop.permute.xlu2 %644 }
 0x917   : > { %vm648_vm5 = vcmp.lt.s32.totalorder %v638_v18, %v645_v23 }
 0x918   : > { %v649_v26 = vsel %vm648_vm5, %v638_v18, %v645_v23  ;;  %vm684_vm5 = vcmp.ne.s32.totalorder %v682_v25, 0 }
 0x919   : > { %v652_v56 = vsel %vm642_vm12, %v649_v26, %v638_v18  ;;  %vm685_vm12 = vcmp.ne.s32.totalorder %v683_v33, 0  ;;  %v719_v26 = vand.u32 2, %v1092_v43 }
 0x91a   : > { %v658_v35 = vrot.slane %v652_v56, 7 }
 0x936   : > { %v647_v27 = vpop.permute.xlu0 %646 }
 0x937   : > { %vm650_vm6 = vcmp.lt.s32.totalorder %v639_v20, %v647_v27 }
 0x938   : > { %v651_v32 = vsel %vm650_vm6, %v639_v20, %v647_v27 }
 0x939   : > { %v653_v34 = vsel %vm643_vm13, %v651_v32, %v639_v20  ;;  %vm1661_vm13 = vcmp.lt.s32.totalorder %v972_v3, 4 }
 0x93a   : > { %v659_v36 = vrot.slane %v653_v34, 7  ;;  %vm1662_vm6 = vmmov %vm1661_vm13 }
 0x93c   : > { %v660_v37 = vsel %vm1657_vm9, %v658_v35, %v659_v36  ;;  %v661_v41 = vsel %vm1658_vm2, %v659_v36, %v658_v35  ;;  %vm698_vm9 = vcmp.ne.s32.totalorder %v696_v59, 0  ;;  %vm699_vm2 = vcmp.ne.s32.totalorder %v697_v60, 0 }
 0x93d   : > { %vm662_vm1 = vcmp.lt.s32.totalorder %v652_v56, %v661_v41  ;;  %vm664_vm0 = vcmp.lt.s32.totalorder %v653_v34, %v660_v37 }
 0x93e   : > { %v663_v45 = vsel %vm662_vm1, %v652_v56, %v661_v41  ;;  %v665_v47 = vsel %vm664_vm0, %v653_v34, %v660_v37  ;;  %vm1663_vm0 = vcmp.lt.s32.totalorder %v972_v3, 7  ;;  %v732_v37 = vand.u32 4, %v1095_v46 }
 0x93f   : > { %v666_v50 = vsel %vm656_vm4, %v663_v45, %v652_v56  ;;  %v667_v51 = vsel %vm657_vm7, %v665_v47, %v653_v34  ;;  %v733_v41 = vand.u32 4, %v1092_v43 }
 0x940   : > { %v672_v58 = vrot.slane %v666_v50, 6  ;;  %v673_v0 = vrot.slane %v667_v51, 6 }
 0x942   : > { %v674_v8 = vsel %vm1659_vm11, %v672_v58, %v673_v0  ;;  %v675_v12 = vsel %vm1660_vm8, %v673_v0, %v672_v58  ;;  %vm1664_vm11 = vmmov %vm1663_vm0 }
 0x943   : > { %vm676_vm3 = vcmp.lt.s32.totalorder %v666_v50, %v675_v12  ;;  %vm678_vm15 = vcmp.lt.s32.totalorder %v667_v51, %v674_v8 }
 0x944   : > { %v677_v53 = vsel %vm676_vm3, %v666_v50, %v675_v12  ;;  %v679_v57 = vsel %vm678_vm15, %v667_v51, %v674_v8  ;;  %vm720_vm15 = vcmp.ne.s32.totalorder %v718_v17, 0 }
 0x945   : > { %v680_v21 = vsel %vm670_vm14, %v677_v53, %v666_v50  ;;  %v681_v54 = vsel %vm671_vm10, %v679_v57, %v667_v51  ;;  %vm706_vm14 = vcmp.ne.s32.totalorder %v704_v9, 0  ;;  %vm707_vm10 = vcmp.ne.s32.totalorder %v705_v48, 0 }
 0x946   : > { %v686_v38 = vrot.slane %v680_v21, 4  ;;  %v687_v55 = vrot.slane %v681_v54, 4  ;;  %v746_v50 = vand.u32 8, %v1095_v46  ;;  %v747_v51 = vand.u32 8, %v1092_v43 }
 0x948   : > { %v688_v62 = vsel %vm1661_vm13, %v686_v38, %v687_v55  ;;  %v689_v40 = vsel %vm1662_vm6, %v687_v55, %v686_v38 }
 0x949   : > { %vm690_vm4 = vcmp.lt.s32.totalorder %v680_v21, %v689_v40  ;;  %vm692_vm7 = vcmp.lt.s32.totalorder %v681_v54, %v688_v62 }
 0x94a   : > { %v691_v63 = vsel %vm690_vm4, %v680_v21, %v689_v40  ;;  %v693_v5 = vsel %vm692_vm7, %v681_v54, %v688_v62  ;;  %vm734_vm7 = vcmp.ne.s32.totalorder %v732_v37, 0 }
 0x94b   : > { %v694_v7 = vsel %vm684_vm5, %v691_v63, %v680_v21  ;;  %v695_v13 = vsel %vm685_vm12, %v693_v5, %v681_v54  ;;  %vm721_vm5 = vcmp.ne.s32.totalorder %v719_v26, 0  ;;  %vm1665_vm12 = vcmp.lt.s32.totalorder %v972_v3, 6 }
 0x94c   : > { %vm700_vm1 = vcmp.lt.s32.totalorder %v694_v7, %v695_v13  ;;  %vm1666_vm13 = vmmov %vm1665_vm12 }
 0x94d   : > { %v701_v11 = vsel %vm700_vm1, %v694_v7, %v695_v13 }
 0x94e   : > { %v702_v4 = vsel %vm698_vm9, %v701_v11, %v694_v7  ;;  %v703_v18 = vsel %vm699_vm2, %v701_v11, %v695_v13  ;;  %vm735_vm9 = vcmp.ne.s32.totalorder %v733_v41, 0  ;;  %vm1667_vm2 = vcmp.lt.s32.totalorder %v972_v3, 4 }
 0x94f   : > { %v708_v61 = vrot.slane %v702_v4, 1  ;;  %v709_v15 = vrot.slane %v703_v18, 1  ;;  %vm1668_vm1 = vmmov %vm1667_vm2 }
 0x951   : > { %v711_v52 = vsel %vm1663_vm0, %v709_v15, %v708_v61  ;;  %v710_v20 = vsel %vm1664_vm11, %v708_v61, %v709_v15  ;;  %vm749_vm11 = vcmp.ne.s32.totalorder %v747_v51, 0 }
 0x952   : > { %vm714_vm8 = vcmp.lt.s32.totalorder %v703_v18, %v711_v52  ;;  %vm712_vm3 = vcmp.lt.s32.totalorder %v702_v4, %v710_v20 }
 0x953   : > { %v715_v23 = vsel %vm714_vm8, %v703_v18, %v711_v52  ;;  %v713_v24 = vsel %vm712_vm3, %v702_v4, %v710_v20  ;;  %vm1669_vm3 = vcmp.gt.f32.partialorder %v964_v1, 0.5 }
 0x954   : > { %v716_v27 = vsel %vm706_vm14, %v713_v24, %v702_v4  ;;  %v717_v56 = vsel %vm707_vm10, %v715_v23, %v703_v18  ;;  %vm748_vm10 = vcmp.ne.s32.totalorder %v746_v50, 0 }
 0x955   : > { %v722_v28 = vrot.slane %v716_v27, 2  ;;  %v723_v31 = vrot.slane %v717_v56, 2 }
 0x957   : > { %v724_v32 = vsel %vm1665_vm12, %v722_v28, %v723_v31  ;;  %v725_v34 = vsel %vm1666_vm13, %v723_v31, %v722_v28  ;;  %vm1672_vm12 = vcmp.lt.s32.totalorder %v972_v3, 7 }
 0x958   : > { %vm726_vm6 = vcmp.lt.s32.totalorder %v716_v27, %v724_v32  ;;  %vm728_vm4 = vcmp.lt.s32.totalorder %v717_v56, %v725_v34 }
 0x959   : > { %v727_v35 = vsel %vm726_vm6, %v716_v27, %v724_v32  ;;  %v729_v36 = vsel %vm728_vm4, %v717_v56, %v725_v34  ;;  %vm1674_vm6 = vmmov %vm1672_vm12  ;;  %vm1675_vm4 = vcmp.gt.s32.totalorder %v972_v3, 0 }
 0x95a   : > { %v730_v42 = vsel %vm720_vm15, %v727_v35, %v716_v27  ;;  %v731_v44 = vsel %vm721_vm5, %v729_v36, %v717_v56  ;;  %vm1670_vm15 = vcmp.gt.f32.partialorder %v969_v2, 0.5  ;;  %vm1671_vm5 = vcmp.lt.s32.totalorder %v972_v3, 1 }
 0x95b   : > { %v736_v45 = vrot.slane %v730_v42, 4  ;;  %v737_v47 = vrot.slane %v731_v44, 4  ;;  %vm1673_vm13 = vmmov %vm1671_vm5 }
 0x95d   : > { %v738_v58 = vsel %vm1667_vm2, %v736_v45, %v737_v47  ;;  %v739_v0 = vsel %vm1668_vm1, %v737_v47, %v736_v45 }
 0x95e   : > { %vm740_vm0 = vcmp.lt.s32.totalorder %v730_v42, %v738_v58  ;;  %vm742_vm14 = vcmp.lt.s32.totalorder %v731_v44, %v739_v0 }
 0x95f   : > { %v741_v8 = vsel %vm740_vm0, %v730_v42, %v738_v58  ;;  %v743_v12 = vsel %vm742_vm14, %v731_v44, %v739_v0  ;;  %vm1677_vm14 = vcmp.lt.s32.totalorder %v978_v6, 127 }
 0x960   : > { %v744_v25 = vsel %vm734_vm7, %v741_v8, %v730_v42  ;;  %v745_v33 = vsel %vm735_vm9, %v743_v12, %v731_v44  ;;  %vm1676_vm7 = vcmp.lt.s32.totalorder %v988_v10, 15 }
 0x961   : > { %vm750_vm8 = vcmp.lt.s32.totalorder %v744_v25, %v745_v33 }
 0x962   : > { %v751_v53 = vsel %vm750_vm8, %v744_v25, %v745_v33 }
 0x963   : > { %v752_v57 = vsel %vm748_vm10, %v751_v53, %v744_v25  ;;  %v753_v21 = vsel %vm749_vm11, %v751_v53, %v745_v33  ;;  %vm1678_vm10 = vcmp.gt.s32.totalorder %v978_v6, 0 }
 0x964   : > { %v754_v54 = vsel %vm1669_vm3, %v752_v57, 1073741824  ;;  %v755_v38 = vsel %vm1670_vm15, %v753_v21, 1073741824  ;;  %vm1679_vm3 = vmmov %vm1678_vm10 }
 0x965   : > { %v756_v55 = vrot.slane %v754_v54, 7  ;;  %v757_v59 = vrot.slane %v755_v38, 7  ;;  %v762_v60 = vrot.slane %v754_v54, 1  ;;  %v763_v62 = vrot.slane %v755_v38, 1  ;;  %vm1680_vm15 = vmmov %vm1677_vm14 }
 0x967   : > { %v759_v40 = vsel %vm1671_vm5, %v757_v59, %v756_v55  ;;  %v764_v63 = vsel %vm1672_vm12, %v762_v60, %v763_v62  ;;  %v758_v5 = vsel %vm1673_vm13, %v756_v55, %v757_v59  ;;  %v765_v7 = vsel %vm1674_vm6, %v763_v62, %v762_v60 }
 0x968   : > { %v760_v13 = vsel %vm1675_vm4, %v759_v40, 1073741824  ;;  %v767_v11 = vsel %vm1676_vm7, %v765_v7, 1073741824  ;;  %vm1681_vm12 = vcmp.gt.f32.partialorder %v964_v1, 0.5  ;;  %vm1682_vm6 = vcmp.gt.f32.partialorder %v969_v2, 0.5 }
 0x969   : > { %vm768_vm9 = vcmp.lt.s32.totalorder %v760_v13, %v764_v63  ;;  %vm770_vm2 = vcmp.lt.s32.totalorder %v758_v5, %v767_v11 }
 0x96a   : > { %v769_v9 = vsel %vm768_vm9, %v760_v13, %v764_v63  ;;  %v771_v48 = vsel %vm770_vm2, %v758_v5, %v767_v11 }
 0x96b   : > { %vm772_vm1 = vcmp.lt.s32.totalorder %v754_v54, %v769_v9  ;;  %vm774_vm0 = vcmp.lt.s32.totalorder %v755_v38, %v771_v48 }
 0x96c   : > { %v773_v4 = vsel %vm772_vm1, %v754_v54, %v769_v9  ;;  %v775_v18 = vsel %vm774_vm0, %v755_v38, %v771_v48 }
 0x96d   : > { %782 = vrot.lane.b32.xlu0 %v773_v4, %s945_s29  ;;  %776 = vrot.lane.b32.xlu1 %v773_v4, %s938_s22 }
 0x96e   : > { %778 = vrot.lane.b32.xlu2 %v775_v18, %s938_s22 }
 0x975   : > { %784 = vrot.lane.b32.xlu1 %v775_v18, %s945_s29 }
 0x9c8   : > { %v779_v24 = vpop.permute.xlu2 %778 }
 0x9c9   : > { %v781_v26 = vsel %vm1679_vm3, %v779_v24, 1073741824 }
 0x9df   : > { %v783_v61 = vpop.permute.xlu0 %782  ;;  %v777_v15 = vpop.permute.xlu1 %776 }
 0x9e0   : > { %v786_v52 = vsel %vm1677_vm14, %v783_v61, 1073741824  ;;  %v780_v20 = vsel %vm1678_vm10, %v777_v15, 1073741824 }
 0x9e1   : > { %vm788_vm11 = vcmp.lt.s32.totalorder %v780_v20, %v786_v52 }
 0x9e2   : > { %v789_v23 = vsel %vm788_vm11, %v780_v20, %v786_v52 }
 0x9e3   : > { %vm792_vm8 = vcmp.lt.s32.totalorder %v773_v4, %v789_v23 }
 0x9e4   : > { %v793_v27 = vsel %vm792_vm8, %v773_v4, %v789_v23 }
 0x9e5   : > { %v796_v31 = vsel %vm1681_vm12, %v793_v27, 1073741824  }
 0x9e6   : > { %v799_v35 = vsub.s32 %v919_v19, %v796_v31 }
 0x9e7   : > { %v785_v17 = vpop.permute.xlu1 %784 }
 0x9e8   : > { %v787_v56 = vsel %vm1680_vm15, %v785_v17, 1073741824 }
 0x9e9   : > { %vm790_vm5 = vcmp.lt.s32.totalorder %v781_v26, %v787_v56 }
 0x9ea   : > { %v791_v28 = vsel %vm790_vm5, %v781_v26, %v787_v56 }
 0x9eb   : > { %vm794_vm13 = vcmp.lt.s32.totalorder %v775_v18, %v791_v28 }
 0x9ec   : > { %v795_v32 = vsel %vm794_vm13, %v775_v18, %v791_v28 }
 0x9ed   : > { %v797_v34 = vsel %vm1682_vm6, %v795_v32, 1073741824  }
 0x9ee   : > { %v800_v36 = vsub.s32 %v915_v30, %v797_v34 }
 0x9f0   : > { %vm801_vm4 = vcmp.gt.s32.totalorder %v799_v35, %v800_v36 }
 0x9f1   : > { %v802_v37 = vsel %vm801_vm4, %v799_v35, %v800_v36 }
 0x9f2   : > { %v804_v41 = vshra.s32 %v802_v37, 16  ;;  %v803_v44 = vand.u32 65535, %v802_v37 }
 0x9f4   : > { %v806_v42 = vcvt.s32.f32 %v804_v41  ;;  %v805_v47 = vcvt.s32.f32 %v803_v44 }
 0x9f6   : > { %807 = vmax.xlane.f32.xlu2 %v806_v42 }
 0xa69   : > { %v808_v45 = vpop.xlane.xlu2 %807 }
 0xa6a   : > { %vm809_vm7 = vcmp.eq.f32.partialorder %v806_v42, %v808_v45  ;;  %v814_v51 = vcvt.f32.s32 %v808_v45 }
 0xa6b   : > { %v810_v50 = vsel %vm809_vm7, %v805_v47, -inf }
 0xa6c   : > { %811 = vmax.xlane.f32.xlu0 %v810_v50  ;;  %v815_v0 = vshll.u32 %v814_v51, 16 }
 0xadf   : > { %v812_v58 = vpop.xlane.xlu0 %811 }
 0xae0   : > { %v813_v8 = vcvt.f32.s32 %v812_v58 }
 0xae2   : > { %v816_v12 = vadd.s32 %v815_v0, %v813_v8 }
 0xae4   : > { %v817_v19 = vrot.slane %v816_v12, 4 }
 0xae6   : > { %vm818_vm9 = vcmp.gt.s32.totalorder %v816_v12, %v817_v19 }
 0xae7   : > { %v819_v30 = vsel %vm818_vm9, %v816_v12, %v817_v19  ;;  %v1684_v19 = vmov %v796_v31 }
 0xae8   : > { %v820_v25 = vrot.slane %v819_v30, 2 }
 0xaea   : > { %vm821_vm2 = vcmp.gt.s32.totalorder %v819_v30, %v820_v25 }
 0xaeb   : > { %v822_v33 = vsel %vm821_vm2, %v819_v30, %v820_v25  ;;  %v1683_v30 = vmov %v797_v34 }
 0xaec   : > { %v823_v53 = vrot.slane %v822_v33, 1 }
 0xaee   : > { %vm824_vm1 = vcmp.gt.s32.totalorder %v822_v33, %v823_v53 }
 0xaef   : > { %v825_v57 = vsel %vm824_vm1, %v822_v33, %v823_v53 }
 0xaf0   : > { %849 = vpush %v825_v57 }
 0xb21   : > { %s850_s6 = spop %849 }
 0xb22   : > { %p827_p0 = scmp.gt.s32.totalorder %s850_s6, 0 }
 0xb24   : > { %p454_p2 = pnand %p827_p0, %p453_p1 }
 0xb25   :  { %vm1685_vm0 = vcmp.gt.f32.partialorder (%p454_p2), %v964_v1, 0.5  ;;  %vm1686_vm14 = vcmp.gt.f32.partialorder (%p454_p2), %v969_v2, 0.5 }
 0xb26   :  { %457 = sbr.rel (!%p454_p2) target bundleno = 797 (0x31d), region = 31  ;;  %v828_v21 = vsel (%p454_p2), %vm1685_vm0, %v796_v31, 0  ;;  %v829_v54 = vsel (%p454_p2), %vm1686_vm14, %v797_v34, 0 }
 0xb27   :  { %830 = vst [vmem:[%s1596_s1] sm:$0xff] (%p454_p2), %v828_v21 }
 0xb28   :  { %831 = vst [vmem:[%s1596_s1 + $0x8] sm:$0xff] (%p454_p2), %v829_v54 }

</bundles_post_ra>
